<compile_context>
chip_gen: v5e
topology: v5e:2x2
jax: 0.10.0
libtpu: 0.0.40
codegen_flags: <defaults>
</compile_context>

<pallas_src>
import jax
import jax.numpy as jnp
from jax import lax
from jax.experimental import pallas as pl
from jax.experimental.pallas import tpu as pltpu


def _round_up(x, m):
    return ((x + m - 1) // m) * m


# ---------------------------------------------------------------------------
# Fused kernel: conv1x1+ReLU -> flatten -> linear_0+ReLU -> linear_1+ReLU
#   x_ref  : (Q, TB, D)    input tile; x_ref[q][b, d] = imat[b, d, q]
#   wct_ref: (D, Hp)       conv weight, pre-transposed, lane-padded
#   bc_ref : (1, Hp)       conv bias (f32)
#   w0r_ref: (Q, Hp, Hp)   linear_0 weight regrouped per query position:
#                          w0r[q, h, o] == w0[o, h*Q + q]  (torch Flatten order)
#   b0_ref : (1, Hp)       linear_0 bias (f32)
#   w1t_ref: (Hp, Hp)      linear_1 weight, pre-transposed
#   b1_ref : (1, Hp)       linear_1 bias (f32)
#   o_ref  : (TB, Hp)      output tile (f32)
#   c_ref  : (Q, TB, Hp)   VMEM scratch holding the conv activation (compute dt)
# ---------------------------------------------------------------------------
def duet_fused_kernel(x_ref, wct_ref, bc_ref, w0r_ref, b0_ref, w1t_ref, b1_ref,
                      o_ref, c_ref):
    q_len, tb, d = x_ref.shape
    hp = o_ref.shape[1]
    cd = wct_ref.dtype                         # matmul operand dtype (f32/bf16)

    # --- Conv1d(k=1) + bias + ReLU for ALL query positions: one MXU push. ---
    # (Q, TB, D) -> (Q*TB, D) is a free leading-dim merge (TB % 8 == 0).
    x2 = x_ref[...].reshape(q_len * tb, d)
    conv = jnp.dot(x2, wct_ref[...], preferred_element_type=jnp.float32)
    conv = jnp.maximum(conv + bc_ref[...], 0.0)            # f32 epilogue, once
    c_ref[...] = conv.reshape(q_len, tb, hp).astype(cd)

    # --- linear_0: K = Hp*Q contraction, K-tiled over query positions. ------
    def body(qi, acc):
        return acc + jnp.dot(c_ref[qi], w0r_ref[qi],
                             preferred_element_type=jnp.float32)

    acc = lax.fori_loop(0, q_len, body,
                        jnp.zeros((tb, hp), jnp.float32), unroll=True)
    z0 = jnp.maximum(acc + b0_ref[...], 0.0)                # linear_0 + ReLU

    # --- linear_1 + ReLU ----------------------------------------------------
    z1 = jnp.dot(z0.astype(cd), w1t_ref[...], preferred_element_type=jnp.float32)
    o_ref[...] = jnp.maximum(z1 + b1_ref[...], 0.0).astype(o_ref.dtype)


# ---------------------------------------------------------------------------
# One-time parameter re-layout (OUTSIDE the hot forward path).
# ---------------------------------------------------------------------------
def prepare_params(params, max_q_len, compute_dtype=jnp.float32, lane_multiple=128):
    """Torch-layout params -> kernel layout (one-time).

    - Conv1d weight (H, D) -> (D, H);  linear_1 weight -> (H_in, H_out).
    - linear_0 weight (H, H*Q) regrouped to (Q, H_in, H_out) so the kernel can
      fold torch's h-major Flatten into a per-query-position accumulation.
    - H is zero-padded to a multiple of 128 lanes (lane-dense MXU N / stores);
      padded columns stay exactly zero through every ReLU, sliced off outside.
    - Matmul operands cast to `compute_dtype` (bf16 on v6e/v7x); biases f32.
    """
    wc, bc, w0, b0, w1, b1 = params
    h, d = wc.shape
    q = max_q_len
    hp = _round_up(h, lane_multiple)
    ph = hp - h
    f32 = jnp.float32

    wct = jnp.pad(wc.T, ((0, 0), (0, ph)))                          # (D, Hp)
    w0r = w0.reshape(h, h, q).transpose(2, 1, 0)                    # (Q, H, H)
    w0r = jnp.pad(w0r, ((0, 0), (0, ph), (0, ph)))                  # (Q, Hp, Hp)
    w1t = jnp.pad(w1.T, ((0, ph), (0, ph)))                         # (Hp, Hp)
    bcp = jnp.pad(bc.reshape(1, h), ((0, 0), (0, ph)))
    b0p = jnp.pad(b0.reshape(1, h), ((0, 0), (0, ph)))
    b1p = jnp.pad(b1.reshape(1, h), ((0, 0), (0, ph)))

    return (wct.astype(compute_dtype), bcp.astype(f32),
            w0r.astype(compute_dtype), b0p.astype(f32),
            w1t.astype(compute_dtype), b1p.astype(f32))


# ---------------------------------------------------------------------------
# One-time input presentation (OUTSIDE the hot forward path):
#   (B, D, Q) torch layout -> (Q, B_pad, D) kernel layout, compute dtype.
# ---------------------------------------------------------------------------
def prepare_input(imat, *, batch_tile=128, compute_dtype=jnp.float32):
    B, D, Q = imat.shape
    b_pad = _round_up(B, batch_tile)
    x3 = jnp.transpose(imat, (2, 0, 1)).astype(compute_dtype)       # (Q, B, D)
    if b_pad != B:
        x3 = jnp.pad(x3, ((0, 0), (0, b_pad - B), (0, 0)))
    return x3


# ---------------------------------------------------------------------------
# Forward: one fused pallas_call, gridded over batch tiles.
# ---------------------------------------------------------------------------
def duet_v2_local_forward(x3, kparams, *, h_dim, batch_tile=128):
    """x3: (Q, B_pad, D) prepped input  ->  (B_pad, h_dim) f32."""
    wct, bc, w0r, b0, w1t, b1 = kparams
    Q, b_pad, D = x3.shape
    Hp = wct.shape[1]
    assert b_pad % batch_tile == 0, "batch must be pre-padded to batch_tile"
    grid = (b_pad // batch_tile,)

    flops = 2 * b_pad * Q * Hp * (D + Hp) + 2 * b_pad * Hp * Hp
    bytes_accessed = sum(int(a.size) * a.dtype.itemsize
                         for a in (x3, wct, bc, w0r, b0, w1t, b1))
    bytes_accessed += b_pad * Hp * 4                                 # output

    out = pl.pallas_call(
        duet_fused_kernel,
        grid=grid,
        in_specs=[
            pl.BlockSpec((Q, batch_tile, D), lambda i: (0, i, 0)),
            pl.BlockSpec((D, Hp), lambda i: (0, 0)),
            pl.BlockSpec((1, Hp), lambda i: (0, 0)),
            pl.BlockSpec((Q, Hp, Hp), lambda i: (0, 0, 0)),
            pl.BlockSpec((1, Hp), lambda i: (0, 0)),
            pl.BlockSpec((Hp, Hp), lambda i: (0, 0)),
            pl.BlockSpec((1, Hp), lambda i: (0, 0)),
        ],
        out_specs=pl.BlockSpec((batch_tile, Hp), lambda i: (i, 0)),
        out_shape=jax.ShapeDtypeStruct((b_pad, Hp), jnp.float32),
        scratch_shapes=[pltpu.VMEM((Q, batch_tile, Hp), wct.dtype)],
        compiler_params=pltpu.CompilerParams(
            dimension_semantics=("parallel",),
            vmem_limit_bytes=48 * 1024 * 1024),
        cost_estimate=pl.CostEstimate(flops=flops, transcendentals=0,
                                      bytes_accessed=bytes_accessed),
    )(x3, wct, bc, w0r, b0, w1t, b1)

    return out[:, :h_dim]                                            # drop lane pad


# ---------------------------------------------------------------------------
# Synthetic parameters (torch layouts) and a plain-JAX reference.
# ---------------------------------------------------------------------------
def init_params(key, h_dim, max_q_len, max_d_len):
    ks = jax.random.split(key, 6)
    scale = 0.05
    wc = scale * jax.random.normal(ks[0], (h_dim, max_d_len), jnp.float32)        # Conv1d (H, D, 1) squeezed
    bc = scale * jax.random.normal(ks[1], (h_dim,), jnp.float32)
    w0 = scale * jax.random.normal(ks[2], (h_dim, h_dim * max_q_len), jnp.float32)
    b0 = scale * jax.random.normal(ks[3], (h_dim,), jnp.float32)
    w1 = scale * jax.random.normal(ks[4], (h_dim, h_dim), jnp.float32)
    b1 = scale * jax.random.normal(ks[5], (h_dim,), jnp.float32)
    return (wc, bc, w0, b0, w1, b1)


def reference_forward(imat, params):
    """Plain-JAX reference mirroring the PyTorch forward (eval mode)."""
    wc, bc, w0, b0, w1, b1 = params
    x = jnp.einsum("hd,bdq->bhq", wc, imat) + bc[None, :, None]      # Conv1d k=1
    x = jnp.maximum(x, 0.0)
    x = x.reshape(x.shape[0], -1)                                    # Flatten (h-major)
    x = jnp.maximum(x @ w0.T + b0, 0.0)                              # linear_0 + relu
    x = jnp.maximum(x @ w1.T + b1, 0.0)                              # linear_1 + relu
    return x


if __name__ == "__main__":
    B, h_dim, max_q_len, max_d_len = 2, 32, 8, 16
    BT = 128                                                          # batch tile

    key = jax.random.PRNGKey(0)
    k_in, k_par = jax.random.split(key)
    imat = jax.random.normal(k_in, (B, max_d_len, max_q_len), jnp.float32)
    params = init_params(k_par, h_dim, max_q_len, max_d_len)
    ref = reference_forward(imat, params)

    fwd = jax.jit(duet_v2_local_forward, static_argnames=("h_dim", "batch_tile"))

    # f32 matmul operands: tight check against the plain-JAX reference.
    kp_f32 = prepare_params(params, max_q_len, compute_dtype=jnp.float32)
    x3_f32 = prepare_input(imat, batch_tile=BT, compute_dtype=jnp.float32)
    out_f32 = jax.block_until_ready(fwd(x3_f32, kp_f32, h_dim=h_dim, batch_tile=BT))[:B]
    assert out_f32.shape == (B, h_dim)
    assert jnp.allclose(out_f32, ref, atol=1e-4, rtol=1e-4), "f32 mismatch vs reference"

    # bf16 operands + bf16 input DMA (v6e/v7x MXU fast path), f32 accumulate/epilogue.
    kp_bf16 = prepare_params(params, max_q_len, compute_dtype=jnp.bfloat16)
    x3_bf16 = prepare_input(imat, batch_tile=BT, compute_dtype=jnp.bfloat16)
    out_bf16 = jax.block_until_ready(fwd(x3_bf16, kp_bf16, h_dim=h_dim, batch_tile=BT))[:B]
    assert out_bf16.shape == (B, h_dim)
    assert jnp.allclose(out_bf16, ref, atol=2e-2, rtol=2e-2), "bf16 mismatch vs reference"

    print("KERNEL_OK")
</pallas_src>

<mosaic_0001>
module attributes {stable_mosaic.version = 11 : i64} {
  func.func @duet_fused_kernel(%arg0: i32, %arg1: memref<8x128x16xf32, #tpu.memory_space<vmem>>, %arg2: memref<16x128xf32, #tpu.memory_space<vmem>>, %arg3: memref<1x128xf32, #tpu.memory_space<vmem>>, %arg4: memref<8x128x128xf32, #tpu.memory_space<vmem>>, %arg5: memref<1x128xf32, #tpu.memory_space<vmem>>, %arg6: memref<128x128xf32, #tpu.memory_space<vmem>>, %arg7: memref<1x128xf32, #tpu.memory_space<vmem>>, %arg8: memref<128x128xf32, #tpu.memory_space<vmem>>, %arg9: memref<8x128x128xf32, #tpu.memory_space<vmem>>) attributes {dimension_semantics = [#tpu.dimension_semantics<parallel>], iteration_bounds = array<i64: 1>, scalar_prefetch = 0 : i64, scratch_operands = 1 : i64, tpu.core_type = #tpu.core_type<tc>, window_params = [{transform_indices = @transform_0, window_bounds = array<i64: 8, 128, 16>}, {pipeline_mode = #tpu.pipeline_mode<synchronous>, transform_indices = @transform_1, window_bounds = array<i64: 16, 128>}, {pipeline_mode = #tpu.pipeline_mode<synchronous>, transform_indices = @transform_2, window_bounds = array<i64: 1, 128>}, {pipeline_mode = #tpu.pipeline_mode<synchronous>, transform_indices = @transform_3, window_bounds = array<i64: 8, 128, 128>}, {pipeline_mode = #tpu.pipeline_mode<synchronous>, transform_indices = @transform_4, window_bounds = array<i64: 1, 128>}, {pipeline_mode = #tpu.pipeline_mode<synchronous>, transform_indices = @transform_5, window_bounds = array<i64: 128, 128>}, {pipeline_mode = #tpu.pipeline_mode<synchronous>, transform_indices = @transform_6, window_bounds = array<i64: 1, 128>}, {transform_indices = @transform_7, window_bounds = array<i64: 128, 128>}]} {
    %c0 = arith.constant 0 : index
    %c0_0 = arith.constant 0 : index
    %c0_1 = arith.constant 0 : index
    %0 = vector.load %arg1[%c0, %c0_0, %c0_1] : memref<8x128x16xf32, #tpu.memory_space<vmem>>, vector<8x128x16xf32>
    %1 = vector.shape_cast %0 : vector<8x128x16xf32> to vector<1024x16xf32>
    %c0_2 = arith.constant 0 : index
    %c0_3 = arith.constant 0 : index
    %2 = vector.load %arg2[%c0_2, %c0_3] : memref<16x128xf32, #tpu.memory_space<vmem>>, vector<16x128xf32>
    %cst = arith.constant dense<0.000000e+00> : vector<1024x128xf32>
    %3 = tpu.matmul %1, %2, %cst {dimension_numbers = #tpu.dot_dimension_numbers<[1], [0], [0], [1], [0, 0, 1, 1], [], []>} : vector<1024x16xf32>, vector<16x128xf32>, vector<1024x128xf32> -> vector<1024x128xf32>
    %c0_4 = arith.constant 0 : index
    %c0_5 = arith.constant 0 : index
    %4 = vector.load %arg3[%c0_4, %c0_5] : memref<1x128xf32, #tpu.memory_space<vmem>>, vector<1x128xf32>
    %5 = vector.broadcast %4 : vector<1x128xf32> to vector<1024x128xf32>
    %6 = arith.addf %3, %5 : vector<1024x128xf32>
    %cst_6 = arith.constant 0.000000e+00 : f32
    %7 = vector.broadcast %cst_6 : f32 to vector<1024x128xf32>
    %8 = arith.maximumf %6, %7 : vector<1024x128xf32>
    %9 = vector.shape_cast %8 : vector<1024x128xf32> to vector<8x128x128xf32>
    %c0_7 = arith.constant 0 : index
    %c0_8 = arith.constant 0 : index
    %c0_9 = arith.constant 0 : index
    %10 = vector.load %arg9[%c0_7, %c0_8, %c0_9] : memref<8x128x128xf32, #tpu.memory_space<vmem>>, vector<8x128x128xf32>
    tpu.vector_store %arg9[%c0_7, %c0_8, %c0_9], %9 {strides = array<i32>} : memref<8x128x128xf32, #tpu.memory_space<vmem>>, vector<8x128x128xf32>,
    %cst_10 = arith.constant 0.000000e+00 : f32
    %11 = vector.broadcast %cst_10 : f32 to vector<128x128xf32>
    %c0_i32 = arith.constant 0 : i32
    %12 = arith.index_cast %c0_i32 : i32 to index
    %c0_11 = arith.constant 0 : index
    %c0_12 = arith.constant 0 : index
    %13 = vector.load %arg9[%12, %c0_11, %c0_12] : memref<8x128x128xf32, #tpu.memory_space<vmem>>, vector<1x128x128xf32>
    %14 = vector.shape_cast %13 : vector<1x128x128xf32> to vector<128x128xf32>
    %15 = arith.index_cast %c0_i32 : i32 to index
    %c0_13 = arith.constant 0 : index
    %c0_14 = arith.constant 0 : index
    %16 = vector.load %arg4[%15, %c0_13, %c0_14] : memref<8x128x128xf32, #tpu.memory_space<vmem>>, vector<1x128x128xf32>
    %17 = vector.shape_cast %16 : vector<1x128x128xf32> to vector<128x128xf32>
    %cst_15 = arith.constant dense<0.000000e+00> : vector<128x128xf32>
    %18 = tpu.matmul %14, %17, %cst_15 {dimension_numbers = #tpu.dot_dimension_numbers<[1], [0], [0], [1], [0, 0, 1, 1], [], []>} : vector<128x128xf32>, vector<128x128xf32>, vector<128x128xf32> -> vector<128x128xf32>
    %19 = arith.addf %11, %18 : vector<128x128xf32>
    %c1_i32 = arith.constant 1 : i32
    %20 = arith.index_cast %c1_i32 : i32 to index
    %c0_16 = arith.constant 0 : index
    %c0_17 = arith.constant 0 : index
    %21 = vector.load %arg9[%20, %c0_16, %c0_17] : memref<8x128x128xf32, #tpu.memory_space<vmem>>, vector<1x128x128xf32>
    %22 = vector.shape_cast %21 : vector<1x128x128xf32> to vector<128x128xf32>
    %23 = arith.index_cast %c1_i32 : i32 to index
    %c0_18 = arith.constant 0 : index
    %c0_19 = arith.constant 0 : index
    %24 = vector.load %arg4[%23, %c0_18, %c0_19] : memref<8x128x128xf32, #tpu.memory_space<vmem>>, vector<1x128x128xf32>
    %25 = vector.shape_cast %24 : vector<1x128x128xf32> to vector<128x128xf32>
    %cst_20 = arith.constant dense<0.000000e+00> : vector<128x128xf32>
    %26 = tpu.matmul %22, %25, %cst_20 {dimension_numbers = #tpu.dot_dimension_numbers<[1], [0], [0], [1], [0, 0, 1, 1], [], []>} : vector<128x128xf32>, vector<128x128xf32>, vector<128x128xf32> -> vector<128x128xf32>
    %27 = arith.addf %19, %26 : vector<128x128xf32>
    %c2_i32 = arith.constant 2 : i32
    %28 = arith.index_cast %c2_i32 : i32 to index
    %c0_21 = arith.constant 0 : index
    %c0_22 = arith.constant 0 : index
    %29 = vector.load %arg9[%28, %c0_21, %c0_22] : memref<8x128x128xf32, #tpu.memory_space<vmem>>, vector<1x128x128xf32>
    %30 = vector.shape_cast %29 : vector<1x128x128xf32> to vector<128x128xf32>
    %31 = arith.index_cast %c2_i32 : i32 to index
    %c0_23 = arith.constant 0 : index
    %c0_24 = arith.constant 0 : index
    %32 = vector.load %arg4[%31, %c0_23, %c0_24] : memref<8x128x128xf32, #tpu.memory_space<vmem>>, vector<1x128x128xf32>
    %33 = vector.shape_cast %32 : vector<1x128x128xf32> to vector<128x128xf32>
    %cst_25 = arith.constant dense<0.000000e+00> : vector<128x128xf32>
    %34 = tpu.matmul %30, %33, %cst_25 {dimension_numbers = #tpu.dot_dimension_numbers<[1], [0], [0], [1], [0, 0, 1, 1], [], []>} : vector<128x128xf32>, vector<128x128xf32>, vector<128x128xf32> -> vector<128x128xf32>
    %35 = arith.addf %27, %34 : vector<128x128xf32>
    %c3_i32 = arith.constant 3 : i32
    %36 = arith.index_cast %c3_i32 : i32 to index
    %c0_26 = arith.constant 0 : index
    %c0_27 = arith.constant 0 : index
    %37 = vector.load %arg9[%36, %c0_26, %c0_27] : memref<8x128x128xf32, #tpu.memory_space<vmem>>, vector<1x128x128xf32>
    %38 = vector.shape_cast %37 : vector<1x128x128xf32> to vector<128x128xf32>
    %39 = arith.index_cast %c3_i32 : i32 to index
    %c0_28 = arith.constant 0 : index
    %c0_29 = arith.constant 0 : index
    %40 = vector.load %arg4[%39, %c0_28, %c0_29] : memref<8x128x128xf32, #tpu.memory_space<vmem>>, vector<1x128x128xf32>
    %41 = vector.shape_cast %40 : vector<1x128x128xf32> to vector<128x128xf32>
    %cst_30 = arith.constant dense<0.000000e+00> : vector<128x128xf32>
    %42 = tpu.matmul %38, %41, %cst_30 {dimension_numbers = #tpu.dot_dimension_numbers<[1], [0], [0], [1], [0, 0, 1, 1], [], []>} : vector<128x128xf32>, vector<128x128xf32>, vector<128x128xf32> -> vector<128x128xf32>
    %43 = arith.addf %35, %42 : vector<128x128xf32>
    %c4_i32 = arith.constant 4 : i32
    %44 = arith.index_cast %c4_i32 : i32 to index
    %c0_31 = arith.constant 0 : index
    %c0_32 = arith.constant 0 : index
    %45 = vector.load %arg9[%44, %c0_31, %c0_32] : memref<8x128x128xf32, #tpu.memory_space<vmem>>, vector<1x128x128xf32>
    %46 = vector.shape_cast %45 : vector<1x128x128xf32> to vector<128x128xf32>
    %47 = arith.index_cast %c4_i32 : i32 to index
    %c0_33 = arith.constant 0 : index
    %c0_34 = arith.constant 0 : index
    %48 = vector.load %arg4[%47, %c0_33, %c0_34] : memref<8x128x128xf32, #tpu.memory_space<vmem>>, vector<1x128x128xf32>
    %49 = vector.shape_cast %48 : vector<1x128x128xf32> to vector<128x128xf32>
    %cst_35 = arith.constant dense<0.000000e+00> : vector<128x128xf32>
    %50 = tpu.matmul %46, %49, %cst_35 {dimension_numbers = #tpu.dot_dimension_numbers<[1], [0], [0], [1], [0, 0, 1, 1], [], []>} : vector<128x128xf32>, vector<128x128xf32>, vector<128x128xf32> -> vector<128x128xf32>
    %51 = arith.addf %43, %50 : vector<128x128xf32>
    %c5_i32 = arith.constant 5 : i32
    %52 = arith.index_cast %c5_i32 : i32 to index
    %c0_36 = arith.constant 0 : index
    %c0_37 = arith.constant 0 : index
    %53 = vector.load %arg9[%52, %c0_36, %c0_37] : memref<8x128x128xf32, #tpu.memory_space<vmem>>, vector<1x128x128xf32>
    %54 = vector.shape_cast %53 : vector<1x128x128xf32> to vector<128x128xf32>
    %55 = arith.index_cast %c5_i32 : i32 to index
    %c0_38 = arith.constant 0 : index
    %c0_39 = arith.constant 0 : index
    %56 = vector.load %arg4[%55, %c0_38, %c0_39] : memref<8x128x128xf32, #tpu.memory_space<vmem>>, vector<1x128x128xf32>
    %57 = vector.shape_cast %56 : vector<1x128x128xf32> to vector<128x128xf32>
    %cst_40 = arith.constant dense<0.000000e+00> : vector<128x128xf32>
    %58 = tpu.matmul %54, %57, %cst_40 {dimension_numbers = #tpu.dot_dimension_numbers<[1], [0], [0], [1], [0, 0, 1, 1], [], []>} : vector<128x128xf32>, vector<128x128xf32>, vector<128x128xf32> -> vector<128x128xf32>
    %59 = arith.addf %51, %58 : vector<128x128xf32>
    %c6_i32 = arith.constant 6 : i32
    %60 = arith.index_cast %c6_i32 : i32 to index
    %c0_41 = arith.constant 0 : index
    %c0_42 = arith.constant 0 : index
    %61 = vector.load %arg9[%60, %c0_41, %c0_42] : memref<8x128x128xf32, #tpu.memory_space<vmem>>, vector<1x128x128xf32>
    %62 = vector.shape_cast %61 : vector<1x128x128xf32> to vector<128x128xf32>
    %63 = arith.index_cast %c6_i32 : i32 to index
    %c0_43 = arith.constant 0 : index
    %c0_44 = arith.constant 0 : index
    %64 = vector.load %arg4[%63, %c0_43, %c0_44] : memref<8x128x128xf32, #tpu.memory_space<vmem>>, vector<1x128x128xf32>
    %65 = vector.shape_cast %64 : vector<1x128x128xf32> to vector<128x128xf32>
    %cst_45 = arith.constant dense<0.000000e+00> : vector<128x128xf32>
    %66 = tpu.matmul %62, %65, %cst_45 {dimension_numbers = #tpu.dot_dimension_numbers<[1], [0], [0], [1], [0, 0, 1, 1], [], []>} : vector<128x128xf32>, vector<128x128xf32>, vector<128x128xf32> -> vector<128x128xf32>
    %67 = arith.addf %59, %66 : vector<128x128xf32>
    %c7_i32 = arith.constant 7 : i32
    %68 = arith.index_cast %c7_i32 : i32 to index
    %c0_46 = arith.constant 0 : index
    %c0_47 = arith.constant 0 : index
    %69 = vector.load %arg9[%68, %c0_46, %c0_47] : memref<8x128x128xf32, #tpu.memory_space<vmem>>, vector<1x128x128xf32>
    %70 = vector.shape_cast %69 : vector<1x128x128xf32> to vector<128x128xf32>
    %71 = arith.index_cast %c7_i32 : i32 to index
    %c0_48 = arith.constant 0 : index
    %c0_49 = arith.constant 0 : index
    %72 = vector.load %arg4[%71, %c0_48, %c0_49] : memref<8x128x128xf32, #tpu.memory_space<vmem>>, vector<1x128x128xf32>
    %73 = vector.shape_cast %72 : vector<1x128x128xf32> to vector<128x128xf32>
    %cst_50 = arith.constant dense<0.000000e+00> : vector<128x128xf32>
    %74 = tpu.matmul %70, %73, %cst_50 {dimension_numbers = #tpu.dot_dimension_numbers<[1], [0], [0], [1], [0, 0, 1, 1], [], []>} : vector<128x128xf32>, vector<128x128xf32>, vector<128x128xf32> -> vector<128x128xf32>
    %75 = arith.addf %67, %74 : vector<128x128xf32>
    %c8_i32 = arith.constant 8 : i32
    %c0_51 = arith.constant 0 : index
    %c0_52 = arith.constant 0 : index
    %76 = vector.load %arg5[%c0_51, %c0_52] : memref<1x128xf32, #tpu.memory_space<vmem>>, vector<1x128xf32>
    %77 = vector.broadcast %76 : vector<1x128xf32> to vector<128x128xf32>
    %78 = arith.addf %75, %77 : vector<128x128xf32>
    %cst_53 = arith.constant 0.000000e+00 : f32
    %79 = vector.broadcast %cst_53 : f32 to vector<128x128xf32>
    %80 = arith.maximumf %78, %79 : vector<128x128xf32>
    %c0_54 = arith.constant 0 : index
    %c0_55 = arith.constant 0 : index
    %81 = vector.load %arg6[%c0_54, %c0_55] : memref<128x128xf32, #tpu.memory_space<vmem>>, vector<128x128xf32>
    %cst_56 = arith.constant dense<0.000000e+00> : vector<128x128xf32>
    %82 = tpu.matmul %80, %81, %cst_56 {dimension_numbers = #tpu.dot_dimension_numbers<[1], [0], [0], [1], [0, 0, 1, 1], [], []>} : vector<128x128xf32>, vector<128x128xf32>, vector<128x128xf32> -> vector<128x128xf32>
    %c0_57 = arith.constant 0 : index
    %c0_58 = arith.constant 0 : index
    %83 = vector.load %arg7[%c0_57, %c0_58] : memref<1x128xf32, #tpu.memory_space<vmem>>, vector<1x128xf32>
    %84 = vector.broadcast %83 : vector<1x128xf32> to vector<128x128xf32>
    %85 = arith.addf %82, %84 : vector<128x128xf32>
    %cst_59 = arith.constant 0.000000e+00 : f32
    %86 = vector.broadcast %cst_59 : f32 to vector<128x128xf32>
    %87 = arith.maximumf %85, %86 : vector<128x128xf32>
    %c0_60 = arith.constant 0 : index
    %c0_61 = arith.constant 0 : index
    %88 = vector.load %arg8[%c0_60, %c0_61] : memref<128x128xf32, #tpu.memory_space<vmem>>, vector<128x128xf32>
    tpu.vector_store %arg8[%c0_60, %c0_61], %87 {strides = array<i32>} : memref<128x128xf32, #tpu.memory_space<vmem>>, vector<128x128xf32>,
    return
  }
  func.func @transform_0(%arg0: i32) -> (i32, i32, i32) {
    %c0_i32 = arith.constant 0 : i32
    %c0_i32_0 = arith.constant 0 : i32
    %c0_i32_1 = arith.constant 0 : i32
    return %c0_i32, %arg0, %c0_i32_0 : i32, i32, i32
  }
  func.func @transform_1(%arg0: i32) -> (i32, i32) {
    %c0_i32 = arith.constant 0 : i32
    %c0_i32_0 = arith.constant 0 : i32
    %c0_i32_1 = arith.constant 0 : i32
    return %c0_i32, %c0_i32_0 : i32, i32
  }
  func.func @transform_2(%arg0: i32) -> (i32, i32) {
    %c0_i32 = arith.constant 0 : i32
    %c0_i32_0 = arith.constant 0 : i32
    %c0_i32_1 = arith.constant 0 : i32
    return %c0_i32, %c0_i32_0 : i32, i32
  }
  func.func @transform_3(%arg0: i32) -> (i32, i32, i32) {
    %c0_i32 = arith.constant 0 : i32
    %c0_i32_0 = arith.constant 0 : i32
    %c0_i32_1 = arith.constant 0 : i32
    %c0_i32_2 = arith.constant 0 : i32
    return %c0_i32, %c0_i32_0, %c0_i32_1 : i32, i32, i32
  }
  func.func @transform_4(%arg0: i32) -> (i32, i32) {
    %c0_i32 = arith.constant 0 : i32
    %c0_i32_0 = arith.constant 0 : i32
    %c0_i32_1 = arith.constant 0 : i32
    return %c0_i32, %c0_i32_0 : i32, i32
  }
  func.func @transform_5(%arg0: i32) -> (i32, i32) {
    %c0_i32 = arith.constant 0 : i32
    %c0_i32_0 = arith.constant 0 : i32
    %c0_i32_1 = arith.constant 0 : i32
    return %c0_i32, %c0_i32_0 : i32, i32
  }
  func.func @transform_6(%arg0: i32) -> (i32, i32) {
    %c0_i32 = arith.constant 0 : i32
    %c0_i32_0 = arith.constant 0 : i32
    %c0_i32_1 = arith.constant 0 : i32
    return %c0_i32, %c0_i32_0 : i32, i32
  }
  func.func @transform_7(%arg0: i32) -> (i32, i32) {
    %c0_i32 = arith.constant 0 : i32
    %c0_i32_0 = arith.constant 0 : i32
    return %arg0, %c0_i32 : i32, i32
  }
}

</mosaic_0001>

<bundles_post_ra>
// kernel: duet_v2_local_forward.1
= control target key start
LH: loop header
LB: loop body
LE: loop exit
PB: predicated region body
PF: predicated region fallthrough
CT: control target
= control target key end

     0   :  { %12 = vsyncpa [#allocation4], 0  ;;  %s4171_s0 = inlined_call_operand.vmem [shape: f32[8,128,16], index: 0, kind: input, shape index: {}]   ;;  %s4172_s1 = inlined_call_operand.hbm [shape: f32[16,128], index: 1, kind: input, shape index: {}]   ;;  %s4173_s2 = inlined_call_operand.vmem [shape: f32[1,128], index: 2, kind: input, shape index: {}]   ;;  %s4174_s3 = inlined_call_operand.vmem [shape: f32[8,128,128], index: 3, kind: input, shape index: {}]   ;;  %s4175_s4 = inlined_call_operand.vmem [shape: f32[1,128], index: 4, kind: input, shape index: {}]   ;;  %s4176_s5 = inlined_call_operand.vmem [shape: f32[128,128], index: 5, kind: input, shape index: {}]   ;;  %s4177_s6 = inlined_call_operand.hbm [shape: f32[1,128], index: 6, kind: input, shape index: {}]   ;;  %s4178_s7 = inlined_call_operand.vmem [shape: f32[128,128], index: 7, kind: output, shape index: {}]  }
   0x1   :  { %s20_s26 = sshll.u32 %s4172_s1, 4  ;;  %s21_s26 = int_to_ptr.hbm [resolvable:$true] %s20_s26 }
   0x2   :  { %13 = vsyncpa [#allocation6], 0  ;;  %s2584_s27 = smov [#allocation3]   ;;  %s42_s8 = sshll.u32 %s4177_s6, 4  ;;  %s43_s8 = int_to_ptr.hbm [resolvable:$true] %s42_s8 }
   0x3   :  { %s22_s28 = sshll.u32 %s2584_s27, 4  ;;  %s2585_s9 = smov 128   ;;  %s23_s28 = int_to_ptr.vmem [resolvable:$true] %s22_s28 }
   0x4   :  { %s2586_s10 = smov 8   ;;  %s2587_s11 = smov [#allocation5]  }
   0x5   :  { %28 = dma.hbm_to_vmem [thread:$0]  %s21_s26, 256, %s23_s28, [#allocation4], %s2585_s9, %s2585_s9, %s2586_s10  }
   0x6   :  { %s44_s12 = sshll.u32 %s2587_s11, 4  ;;  %s45_s12 = int_to_ptr.vmem [resolvable:$true] %s44_s12 }
   0x7   :  { %47 = dma.hbm_to_vmem [thread:$0]  %s43_s8, 16, %s45_s12, [#allocation6]  }
   0x8   :  { %2580 = dma.done.wait [#allocation4], 256  }
   0x9   :  { %2581 = vsyncadd [#allocation4], 4294967040 }
   0xa   :  { %2582 = dma.done.wait [#allocation6], 16  }
   0xb   :  { %2583 = vsyncadd [#allocation6], 4294967280  ;;  %v185_v0 = vld [vmem:[#allocation3 + $0x8] sm:$0xff]  ;;  %v184_v1 = vld [vmem:[#allocation3] sm:$0xff]  ;;  %vm190_vm0 = vcmask 130048  }
   0xc   :  { %589 = vmatpush.msra.mxu0 %v185_v0  ;;  %2518 = vmatpush.msra.mxu2 %v185_v0  ;;  %v56_v2 = vld [vmem:[%s4171_s0] sm:$0xff]  ;;  %v147_v3 = vld [vmem:[%s4171_s0 + $0x2d8] sm:$0xff]  ;;  %v57_v4 = vld [vmem:[%s4171_s0 + $0x8] sm:$0xff] }
   0xd   :  { %2517 = vmatpush.msra.mxu1 %v185_v0  ;;  %2519 = vmatpush.msra.mxu3 %v185_v0  ;;  %v148_v5 = vld [vmem:[%s4171_s0 + $0x2e0] sm:$0xff]  ;;  %v58_v6 = vld [vmem:[%s4171_s0 + $0x10] sm:$0xff]  ;;  %v149_v7 = vld [vmem:[%s4171_s0 + $0x2e8] sm:$0xff] }
   0xe   :  { %590 = vmatpush.msra.mxu0 %v184_v1  ;;  %2521 = vmatpush.msra.mxu2 %v184_v1  ;;  %v59_v8 = vld [vmem:[%s4171_s0 + $0x18] sm:$0xff]  ;;  %v150_v9 = vld [vmem:[%s4171_s0 + $0x2f0] sm:$0xff]  ;;  %v60_v10 = vld [vmem:[%s4171_s0 + $0x20] sm:$0xff] }
   0xf   :  { %2277 = vmatmul.msk.f32.vlgmr.msra.gmra.mxu0 %vm190_vm0, %v56_v2  ;;  %2368 = vmatmul.msk.f32.vlgmr.msra.gmra.mxu2 %vm190_vm0, %v147_v3  ;;  %v151_v11 = vld [vmem:[%s4171_s0 + $0x2f8] sm:$0xff]  ;;  %v61_v12 = vld [vmem:[%s4171_s0 + $0x28] sm:$0xff]  ;;  %v152_v13 = vld [vmem:[%s4171_s0 + $0x300] sm:$0xff] }
  0x10   :  { %2520 = vmatpush.msra.mxu1 %v184_v1  ;;  %2522 = vmatpush.msra.mxu3 %v184_v1  ;;  %v62_v14 = vld [vmem:[%s4171_s0 + $0x30] sm:$0xff]  ;;  %v153_v15 = vld [vmem:[%s4171_s0 + $0x308] sm:$0xff]  ;;  %v63_v16 = vld [vmem:[%s4171_s0 + $0x38] sm:$0xff] }
  0x11   :  { %v154_v17 = vld [vmem:[%s4171_s0 + $0x310] sm:$0xff]  ;;  %v64_v19 = vld [vmem:[%s4171_s0 + $0x40] sm:$0xff]  ;;  %v155_v20 = vld [vmem:[%s4171_s0 + $0x318] sm:$0xff] }
  0x12   :  { %v126_v18 = vld [vmem:[%s4171_s0 + $0x230] sm:$0xff]  ;;  %v127_v21 = vld [vmem:[%s4171_s0 + $0x238] sm:$0xff]  ;;  %v65_v22 = vld [vmem:[%s4171_s0 + $0x48] sm:$0xff] }
  0x13   :  { %2347 = vmatmul.msk.f32.vlgmr.msra.gmra.mxu1 %vm190_vm0, %v126_v18  ;;  %v156_v23 = vld [vmem:[%s4171_s0 + $0x320] sm:$0xff]  ;;  %v66_v25 = vld [vmem:[%s4171_s0 + $0x50] sm:$0xff]  ;;  %v157_v26 = vld [vmem:[%s4171_s0 + $0x328] sm:$0xff] }
  0x14   :  { %v128_v24 = vld [vmem:[%s4171_s0 + $0x240] sm:$0xff]  ;;  %v129_v27 = vld [vmem:[%s4171_s0 + $0x248] sm:$0xff]  ;;  %v67_v28 = vld [vmem:[%s4171_s0 + $0x58] sm:$0xff] }
  0x15   :  { %v158_v29 = vld [vmem:[%s4171_s0 + $0x330] sm:$0xff]  ;;  %v68_v31 = vld [vmem:[%s4171_s0 + $0x60] sm:$0xff]  ;;  %v159_v32 = vld [vmem:[%s4171_s0 + $0x338] sm:$0xff] }
  0x16   :  { %v130_v30 = vld [vmem:[%s4171_s0 + $0x250] sm:$0xff]  ;;  %v1263_v33 = vld [vmem:[%s4174_s3 + $0x78] sm:$0xff]  ;;  %v1261_v36 = vld [vmem:[%s4174_s3 + $0x68] sm:$0xff] }
  0x17   :  { %2278 = vmatmul.msk.f32.gmra.mxu0 %vm190_vm0, %v57_v4  ;;  %2369 = vmatmul.msk.f32.gmra.mxu2 %vm190_vm0, %v148_v5  ;;  %v131_v34 = vld [vmem:[%s4171_s0 + $0x258] sm:$0xff]  ;;  %v1262_v35 = vld [vmem:[%s4174_s3 + $0x70] sm:$0xff]  ;;  %v69_v37 = vld [vmem:[%s4171_s0 + $0x68] sm:$0xff] }
  0x18   :  { %1363 = vmatpush.msrb.mxu2 %v1263_v33  ;;  %v160_v38 = vld [vmem:[%s4171_s0 + $0x340] sm:$0xff]  ;;  %v1259_v40 = vld [vmem:[%s4174_s3 + $0x58] sm:$0xff]  ;;  %v1258_v42 = vld [vmem:[%s4174_s3 + $0x50] sm:$0xff] }
  0x19   :  { %v1260_v39 = vld [vmem:[%s4174_s3 + $0x60] sm:$0xff]  ;;  %v1257_v43 = vld [vmem:[%s4174_s3 + $0x48] sm:$0xff]  ;;  %v70_v44 = vld [vmem:[%s4171_s0 + $0x70] sm:$0xff] }
  0x1a   :  { %1364 = vmatpush.msrb.mxu2 %v1262_v35  ;;  %v132_v41 = vld [vmem:[%s4171_s0 + $0x260] sm:$0xff]  ;;  %v161_v45 = vld [vmem:[%s4171_s0 + $0x348] sm:$0xff]  ;;  %v1255_v47 = vld [vmem:[%s4174_s3 + $0x38] sm:$0xff] }
  0x1b   :  { %2348 = vmatmul.msk.f32.gmra.mxu1 %vm190_vm0, %v127_v21  ;;  %v1256_v46 = vld [vmem:[%s4174_s3 + $0x40] sm:$0xff]  ;;  %v133_v48 = vld [vmem:[%s4171_s0 + $0x268] sm:$0xff]  ;;  %v1254_v49 = vld [vmem:[%s4174_s3 + $0x30] sm:$0xff] }
  0x1c   :  { %1365 = vmatpush.msrb.mxu2 %v1261_v36  ;;  %v1253_v50 = vld [vmem:[%s4174_s3 + $0x28] sm:$0xff]  ;;  %v71_v51 = vld [vmem:[%s4171_s0 + $0x78] sm:$0xff]  ;;  %v162_v52 = vld [vmem:[%s4171_s0 + $0x350] sm:$0xff] }
  0x1d   :  { %v1252_v53 = vld [vmem:[%s4174_s3 + $0x20] sm:$0xff]  ;;  %v1251_v54 = vld [vmem:[%s4174_s3 + $0x18] sm:$0xff]  ;;  %v134_v55 = vld [vmem:[%s4171_s0 + $0x270] sm:$0xff] }
  0x1e   :  { %1366 = vmatpush.msrb.mxu2 %v1260_v39  ;;  %v1250_v56 = vld [vmem:[%s4174_s3 + $0x10] sm:$0xff]  ;;  %v1249_v57 = vld [vmem:[%s4174_s3 + $0x8] sm:$0xff]  ;;  %v72_v59 = vld [vmem:[%s4171_s0 + $0x80] sm:$0xff] }
  0x1f   :  { %2279 = vmatmul.msk.f32.gmra.mxu0 %vm190_vm0, %v58_v6  ;;  %2370 = vmatmul.msk.f32.gmra.mxu2 %vm190_vm0, %v149_v7  ;;  %v163_v60 = vld [vmem:[%s4171_s0 + $0x358] sm:$0xff]  ;;  %v1248_v61 = vld [vmem:[%s4174_s3] sm:$0xff]  ;;  %v73_v0 = vld [vmem:[%s4171_s0 + $0x88] sm:$0xff] }
  0x20   :  { %1367 = vmatpush.msrb.mxu2 %v1259_v40  ;;  %v135_v62 = vld [vmem:[%s4171_s0 + $0x278] sm:$0xff]  ;;  %v164_v1 = vld [vmem:[%s4171_s0 + $0x360] sm:$0xff]  ;;  %v74_v4 = vld [vmem:[%s4171_s0 + $0x90] sm:$0xff] }
  0x21   :  { %v136_v2 = vld [vmem:[%s4171_s0 + $0x280] sm:$0xff]  ;;  %v165_v5 = vld [vmem:[%s4171_s0 + $0x368] sm:$0xff]  ;;  %v142_v33 = vld [vmem:[%s4171_s0 + $0x2b0] sm:$0xff] }
  0x22   :  { %1368 = vmatpush.msrb.mxu2 %v1258_v42  ;;  %v137_v6 = vld [vmem:[%s4171_s0 + $0x288] sm:$0xff]  ;;  %v140_v21 = vld [vmem:[%s4171_s0 + $0x2a0] sm:$0xff]  ;;  %v143_v39 = vld [vmem:[%s4171_s0 + $0x2b8] sm:$0xff] }
  0x23   :  { %2349 = vmatmul.msk.f32.gmra.mxu1 %vm190_vm0, %v128_v24  ;;  %v80_v36 = vld [vmem:[%s4171_s0 + $0xc0] sm:$0xff]  ;;  %v2419_v42 = vld [vmem:[%s4174_s3 + $0xf0] sm:$0xff] }
  0x24   :  { %1369 = vmatpush.msrb.mxu2 %v1257_v43 }
  0x26   :  { %1370 = vmatpush.msrb.mxu2 %v1256_v46  ;;  %v2418_v46 = vld [vmem:[%s4174_s3 + $0xe8] sm:$0xff] }
  0x27   :  { %2280 = vmatmul.msk.f32.gmra.mxu0 %vm190_vm0, %v59_v8  ;;  %2371 = vmatmul.msk.f32.gmra.mxu2 %vm190_vm0, %v150_v9  ;;  %v75_v8 = vld [vmem:[%s4171_s0 + $0x98] sm:$0xff]  ;;  %v166_v9 = vld [vmem:[%s4171_s0 + $0x370] sm:$0xff] }
  0x28   :  { %1371 = vmatpush.msrb.mxu2 %v1255_v47 }
  0x2a   :  { %1372 = vmatpush.msrb.mxu2 %v1254_v49  ;;  %v144_v49 = vld [vmem:[%s4171_s0 + $0x2c0] sm:$0xff] }
  0x2b   :  { %2350 = vmatmul.msk.f32.gmra.mxu1 %vm190_vm0, %v129_v27  ;;  %v141_v27 = vld [vmem:[%s4171_s0 + $0x2a8] sm:$0xff] }
  0x2c   :  { %1373 = vmatpush.msrb.mxu2 %v1253_v50 }
  0x2e   :  { %1374 = vmatpush.msrb.mxu2 %v1252_v53 }
  0x2f   :  { %2281 = vmatmul.msk.f32.gmra.mxu0 %vm190_vm0, %v60_v10  ;;  %2372 = vmatmul.msk.f32.gmra.mxu2 %vm190_vm0, %v151_v11  ;;  %v2891_v10 = vld [vmem:[%s4173_s2] ss:$0 sm:$0xff]  ;;  %v138_v11 = vld [vmem:[%s4171_s0 + $0x290] sm:$0xff] }
  0x30   :  { %1375 = vmatpush.msrb.mxu2 %v1251_v54  ;;  %v82_v54 = vld [vmem:[%s4171_s0 + $0xd0] sm:$0xff] }
  0x32   :  { %1376 = vmatpush.msrb.mxu2 %v1250_v56  ;;  %v2414_v56 = vld [vmem:[%s4174_s3 + $0xc8] sm:$0xff] }
  0x33   :  { %2351 = vmatmul.msk.f32.gmra.mxu1 %vm190_vm0, %v130_v30 }
  0x34   :  { %1377 = vmatpush.msrb.mxu2 %v1249_v57  ;;  %v2413_v57 = vld [vmem:[%s4174_s3 + $0xc0] sm:$0xff] }
  0x36   :  { %1378 = vmatpush.msrb.mxu2 %v1248_v61  ;;  %v2412_v61 = vld [vmem:[%s4174_s3 + $0xb8] sm:$0xff] }
  0x37   :  { %2282 = vmatmul.msk.f32.gmra.mxu0 %vm190_vm0, %v61_v12  ;;  %2373 = vmatmul.msk.f32.gmra.mxu2 %vm190_vm0, %v152_v13 }
  0x3b   :  { %2352 = vmatmul.msk.f32.gmra.mxu1 %vm190_vm0, %v131_v34 }
  0x3f   :  { %2283 = vmatmul.msk.f32.gmra.mxu0 %vm190_vm0, %v62_v14  ;;  %2374 = vmatmul.msk.f32.gmra.mxu2 %vm190_vm0, %v153_v15  ;;  %v76_v14 = vld [vmem:[%s4171_s0 + $0xa0] sm:$0xff] }
  0x43   :  { %2353 = vmatmul.msk.f32.gmra.mxu1 %vm190_vm0, %v132_v41  ;;  %v2420_v41 = vld [vmem:[%s4174_s3 + $0xf8] sm:$0xff] }
  0x44   :  { %1298 = vmatpush.msrb.mxu1 %v2420_v41 }
  0x46   :  { %1299 = vmatpush.msrb.mxu1 %v2419_v42 }
  0x47   :  { %2284 = vmatmul.msk.f32.gmra.mxu0 %vm190_vm0, %v63_v16  ;;  %2375 = vmatmul.msk.f32.gmra.mxu2 %vm190_vm0, %v154_v17  ;;  %v139_v16 = vld [vmem:[%s4171_s0 + $0x298] sm:$0xff] }
  0x48   :  { %1300 = vmatpush.msrb.mxu1 %v2418_v46 }
  0x4b   :  { %2354 = vmatmul.msk.f32.gmra.mxu1 %vm190_vm0, %v133_v48  ;;  %v2417_v48 = vld [vmem:[%s4174_s3 + $0xe0] sm:$0xff] }
  0x4c   :  { %1301 = vmatpush.msrb.mxu1 %v2417_v48 }
  0x4f   :  { %2285 = vmatmul.msk.f32.gmra.mxu0 %vm190_vm0, %v64_v19  ;;  %2376 = vmatmul.msk.f32.gmra.mxu2 %vm190_vm0, %v155_v20  ;;  %v77_v19 = vld [vmem:[%s4171_s0 + $0xa8] sm:$0xff] }
  0x53   :  { %2355 = vmatmul.msk.f32.gmra.mxu1 %vm190_vm0, %v134_v55 }
  0x57   :  { %2286 = vmatmul.msk.f32.gmra.mxu0 %vm190_vm0, %v65_v22  ;;  %2377 = vmatmul.msk.f32.gmra.mxu2 %vm190_vm0, %v156_v23 }
  0x5b   :  { %2356 = vmatmul.msk.f32.gmra.mxu1 %vm190_vm0, %v135_v62  ;;  %v2411_v62 = vld [vmem:[%s4174_s3 + $0xb0] sm:$0xff] }
  0x5f   :  { %2287 = vmatmul.msk.f32.gmra.mxu0 %vm190_vm0, %v66_v25  ;;  %2378 = vmatmul.msk.f32.gmra.mxu2 %vm190_vm0, %v157_v26  ;;  %v78_v25 = vld [vmem:[%s4171_s0 + $0xb0] sm:$0xff] }
  0x63   :  { %2357 = vmatmul.msk.f32.gmra.mxu1 %vm190_vm0, %v136_v2  ;;  %v2410_v2 = vld [vmem:[%s4174_s3 + $0xa8] sm:$0xff] }
  0x67   :  { %2288 = vmatmul.msk.f32.gmra.mxu0 %vm190_vm0, %v67_v28  ;;  %2379 = vmatmul.msk.f32.gmra.mxu2 %vm190_vm0, %v158_v29 }
  0x6b   :  { %2358 = vmatmul.msk.f32.gmra.mxu1 %vm190_vm0, %v137_v6 }
  0x6f   :  { %2289 = vmatmul.msk.f32.gmra.mxu0 %vm190_vm0, %v68_v31  ;;  %2380 = vmatmul.msk.f32.gmra.mxu2 %vm190_vm0, %v159_v32  ;;  %v79_v31 = vld [vmem:[%s4171_s0 + $0xb8] sm:$0xff] }
  0x73   :  { %2359 = vmatmul.msk.f32.gmra.mxu1 %vm190_vm0, %v138_v11 }
  0x77   :  { %2290 = vmatmul.msk.f32.gmra.mxu0 %vm190_vm0, %v69_v37  ;;  %2381 = vmatmul.msk.f32.gmra.mxu2 %vm190_vm0, %v160_v38 }
  0x7b   :  { %2360 = vmatmul.msk.f32.gmra.mxu1 %vm190_vm0, %v139_v16  ;;  %v168_v16 = vld [vmem:[%s4171_s0 + $0x380] sm:$0xff] }
  0x7f   :  { %2291 = vmatmul.msk.f32.gmra.mxu0 %vm190_vm0, %v70_v44  ;;  %2382 = vmatmul.msk.f32.gmra.mxu2 %vm190_vm0, %v161_v45  ;;  %v81_v44 = vld [vmem:[%s4171_s0 + $0xc8] sm:$0xff] }
  0x83   :  { %2361 = vmatmul.msk.f32.gmra.mxu1 %vm190_vm0, %v140_v21 }
  0x87   :  { %2292 = vmatmul.msk.f32.gmra.mxu0 %vm190_vm0, %v71_v51  ;;  %2383 = vmatmul.msk.f32.gmra.mxu2 %vm190_vm0, %v162_v52  ;;  %v2416_v51 = vld [vmem:[%s4174_s3 + $0xd8] sm:$0xff]  ;;  %v2415_v52 = vld [vmem:[%s4174_s3 + $0xd0] sm:$0xff] }
  0x88   :  { %1302 = vmatpush.msrb.mxu1 %v2416_v51 }
  0x8a   :  { %1303 = vmatpush.msrb.mxu1 %v2415_v52 }
  0x8b   :  { %2362 = vmatmul.msk.f32.gmra.mxu1 %vm190_vm0, %v141_v27 }
  0x8c   :  { %v592_v58 = vpop.f32.mrf.mxu0  ;;  %1304 = vmatpush.msrb.mxu1 %v2414_v56 }
  0x8d   :  { %v593_v12 = vadd.f32 %v2891_v10, %v592_v58  ;;  %v145_v58 = vld [vmem:[%s4171_s0 + $0x2c8] sm:$0xff] }
  0x8e   :  { %1305 = vmatpush.msrb.mxu1 %v2413_v57 }
  0x8f   :  { %2293 = vmatmul.msk.f32.gmra.mxu0 %vm190_vm0, %v72_v59  ;;  %2384 = vmatmul.msk.f32.gmra.mxu2 %vm190_vm0, %v163_v60  ;;  %v976_v15 = vmax.f32 %v593_v12, 0.0  ;;  %v84_v12 = vld [vmem:[%s4171_s0 + $0xe0] sm:$0xff] }
  0x90   :  { %1306 = vmatpush.msrb.mxu1 %v2412_v61 }
  0x92   :  { %v2917_v22 = vpop.f32.mrf.mxu2  ;;  %1307 = vmatpush.msrb.mxu1 %v2411_v62 }
  0x93   :  { %2363 = vmatmul.msk.f32.gmra.mxu1 %vm190_vm0, %v142_v33  ;;  %v87_v33 = vld [vmem:[%s4171_s0 + $0xf8] sm:$0xff] }
  0x94   :  { %v595_v63 = vpop.f32.mrf.mxu0  ;;  %1308 = vmatpush.msrb.mxu1 %v2410_v2 }
  0x95   :  { %v596_v17 = vadd.f32 %v2891_v10, %v595_v63 }
  0x97   :  { %2294 = vmatmul.msk.f32.gmra.mxu0 %vm190_vm0, %v73_v0  ;;  %2385 = vmatmul.msk.f32.gmra.mxu2 %vm190_vm0, %v164_v1  ;;  %v977_v20 = vmax.f32 %v596_v17, 0.0  ;;  %v83_v0 = vld [vmem:[%s4171_s0 + $0xd8] sm:$0xff] }
  0x9a   :  { %v2929_v29 = vpop.f32.mrf.mxu2 }
  0x9b   :  { %2364 = vmatmul.msk.f32.gmra.mxu1 %vm190_vm0, %v143_v39 }
  0x9c   :  { %v598_v3 = vpop.f32.mrf.mxu0 }
  0x9d   :  { %v599_v23 = vadd.f32 %v2891_v10, %v598_v3  ;;  %v2409_v3 = vld [vmem:[%s4174_s3 + $0xa0] sm:$0xff] }
  0x9e   :  { %1309 = vmatpush.msrb.mxu1 %v2409_v3  ;;  %v91_v3 = vld [vmem:[%s4171_s0 + $0x118] sm:$0xff] }
  0x9f   :  { %2295 = vmatmul.msk.f32.gmra.mxu0 %vm190_vm0, %v74_v4  ;;  %2386 = vmatmul.msk.f32.gmra.mxu2 %vm190_vm0, %v165_v5  ;;  %v978_v26 = vmax.f32 %v599_v23, 0.0  ;;  %v146_v4 = vld [vmem:[%s4171_s0 + $0x2d0] sm:$0xff]  ;;  %v167_v5 = vld [vmem:[%s4171_s0 + $0x378] sm:$0xff]  ;;  %v169_v23 = vld [vmem:[%s4171_s0 + $0x388] sm:$0xff] }
  0xa0   :  { %2388 = vmatmul.msk.f32.vlgmr.msra.gmra.mxu3 %vm190_vm0, %v167_v5 }
  0xa2   :  { %v2943_v37 = vpop.f32.mrf.mxu2 }
  0xa3   :  { %2365 = vmatmul.msk.f32.gmra.mxu1 %vm190_vm0, %v144_v49 }
  0xa4   :  { %v601_v7 = vpop.f32.mrf.mxu0 }
  0xa5   :  { %v602_v28 = vadd.f32 %v2891_v10, %v601_v7  ;;  %v2408_v7 = vld [vmem:[%s4174_s3 + $0x98] sm:$0xff] }
  0xa6   :  { %1310 = vmatpush.msrb.mxu1 %v2408_v7 }
  0xa7   :  { %2296 = vmatmul.msk.f32.gmra.mxu0 %vm190_vm0, %v75_v8  ;;  %2387 = vmatmul.msk.f32.gmra.mxu2 %vm190_vm0, %v166_v9  ;;  %v979_v32 = vmax.f32 %v602_v28, 0.0  ;;  %v2407_v9 = vld [vmem:[%s4174_s3 + $0x90] sm:$0xff] }
  0xa8   :  { %1311 = vmatpush.msrb.mxu1 %v2407_v9  ;;  %2389 = vmatmul.msk.f32.gmra.mxu3 %vm190_vm0, %v168_v16 }
  0xaa   :  { %v2965_v47 = vpop.f32.mrf.mxu2 }
  0xab   :  { %2366 = vmatmul.msk.f32.gmra.mxu1 %vm190_vm0, %v145_v58  ;;  %v90_v58 = vld [vmem:[%s4171_s0 + $0x110] sm:$0xff] }
  0xac   :  { %v604_v13 = vpop.f32.mrf.mxu0 }
  0xad   :  { %v605_v34 = vadd.f32 %v2891_v10, %v604_v13 }
  0xaf   :  { %2297 = vmatmul.msk.f32.gmra.mxu0 %vm190_vm0, %v76_v14  ;;  %1379 = vmatmul.f32.vlgmr.msrb.gmra.mxu2 %v976_v15  ;;  %v980_v38 = vmax.f32 %v605_v34, 0.0  ;;  %v2406_v14 = vld [vmem:[%s4174_s3 + $0x88] sm:$0xff]  ;;  %v2405_v15 = vld [vmem:[%s4174_s3 + $0x80] sm:$0xff] }
  0xb0   :  { %1312 = vmatpush.msrb.mxu1 %v2406_v14  ;;  %2390 = vmatmul.msk.f32.gmra.mxu3 %vm190_vm0, %v169_v23 }
  0xb2   :  { %v2995_v59 = vpop.f32.mrf.mxu2  ;;  %1313 = vmatpush.msrb.mxu1 %v2405_v15 }
  0xb3   :  { %2367 = vmatmul.msk.f32.gmra.mxu1 %vm190_vm0, %v146_v4 }
  0xb4   :  { %v607_v18 = vpop.f32.mrf.mxu0 }
  0xb5   :  { %v608_v40 = vadd.f32 %v2891_v10, %v607_v18 }
  0xb7   :  { %2298 = vmatmul.msk.f32.gmra.mxu0 %vm190_vm0, %v77_v19  ;;  %1382 = vmatmul.f32.gmra.mxu2 %v977_v20  ;;  %v981_v45 = vmax.f32 %v608_v40, 0.0  ;;  %v85_v19 = vld [vmem:[%s4171_s0 + $0xe8] sm:$0xff]  ;;  %v88_v40 = vld [vmem:[%s4171_s0 + $0x100] sm:$0xff] }
  0xba   :  { %v3027_v8 = vpop.f32.mrf.mxu2 }
  0xbc   :  { %v610_v24 = vpop.f32.mrf.mxu0 }
  0xbd   :  { %v611_v50 = vadd.f32 %v2891_v10, %v610_v24 }
  0xbf   :  { %2299 = vmatmul.msk.f32.gmra.mxu0 %vm190_vm0, %v78_v25  ;;  %1385 = vmatmul.f32.gmra.mxu2 %v978_v26  ;;  %v982_v55 = vmax.f32 %v611_v50, 0.0  ;;  %v86_v26 = vld [vmem:[%s4171_s0 + $0xf0] sm:$0xff]  ;;  %v89_v50 = vld [vmem:[%s4171_s0 + $0x108] sm:$0xff] }
  0xc2   :  { %v3051_v20 = vpop.f32.mrf.mxu2 }
  0xc4   :  { %v613_v30 = vpop.f32.mrf.mxu0 }
  0xc5   :  { %v614_v60 = vadd.f32 %v2891_v10, %v613_v30  ;;  %v170_v30 = vld [vmem:[%s4171_s0 + $0x390] sm:$0xff] }
  0xc6   :  { %2391 = vmatmul.msk.f32.gmra.mxu3 %vm190_vm0, %v170_v30 }
  0xc7   :  { %2300 = vmatmul.msk.f32.gmra.mxu0 %vm190_vm0, %v79_v31  ;;  %1388 = vmatmul.f32.gmra.mxu2 %v979_v32  ;;  %v983_v1 = vmax.f32 %v614_v60, 0.0 }
  0xca   :  { %v3062_v28 = vpop.f32.mrf.mxu2 }
  0xcc   :  { %v616_v35 = vpop.f32.mrf.mxu0 }
  0xcd   :  { %v617_v6 = vadd.f32 %v2891_v10, %v616_v35  ;;  %v171_v35 = vld [vmem:[%s4171_s0 + $0x398] sm:$0xff] }
  0xce   :  { %2392 = vmatmul.msk.f32.gmra.mxu3 %vm190_vm0, %v171_v35  ;;  %v95_v35 = vld [vmem:[%s4171_s0 + $0x138] sm:$0xff] }
  0xcf   :  { %2301 = vmatmul.msk.f32.gmra.mxu0 %vm190_vm0, %v80_v36  ;;  %1391 = vmatmul.f32.gmra.mxu2 %v980_v38  ;;  %v984_v13 = vmax.f32 %v617_v6, 0.0 }
  0xd2   :  { %v3078_v36 = vpop.f32.mrf.mxu2 }
  0xd4   :  { %v2957_v43 = vpop.f32.mrf.mxu0 }
  0xd5   :  { %v620_v17 = vadd.f32 %v2891_v10, %v2957_v43 }
  0xd7   :  { %2302 = vmatmul.msk.f32.gmra.mxu0 %vm190_vm0, %v81_v44  ;;  %1394 = vmatmul.f32.gmra.mxu2 %v981_v45  ;;  %v985_v21 = vmax.f32 %v620_v17, 0.0  ;;  %v172_v44 = vld [vmem:[%s4171_s0 + $0x3a0] sm:$0xff]  ;;  %v3090_v45 = vpop.f32.mrf.mxu1 }
  0xd8   :  { %2393 = vmatmul.msk.f32.gmra.mxu3 %vm190_vm0, %v172_v44  ;;  %v176_v17 = vld [vmem:[%s4171_s0 + $0x3c0] sm:$0xff] }
  0xda   :  { %v3093_v48 = vpop.f32.mrf.mxu2 }
  0xdc   :  { %v622_v53 = vpop.f32.mrf.mxu0 }
  0xdd   :  { %v623_v24 = vadd.f32 %v2891_v10, %v622_v53 }
  0xdf   :  { %2303 = vmatmul.msk.f32.gmra.mxu0 %vm190_vm0, %v82_v54  ;;  %1397 = vmatmul.f32.gmra.mxu2 %v982_v55  ;;  %v986_v27 = vmax.f32 %v623_v24, 0.0  ;;  %v173_v54 = vld [vmem:[%s4171_s0 + $0x3a8] sm:$0xff]  ;;  %v3105_v56 = vpop.f32.mrf.mxu1 }
  0xe0   :  { %2394 = vmatmul.msk.f32.gmra.mxu3 %vm190_vm0, %v173_v54  ;;  %v177_v24 = vld [vmem:[%s4171_s0 + $0x3c8] sm:$0xff] }
  0xe2   :  { %v3110_v60 = vpop.f32.mrf.mxu2 }
  0xe4   :  { %v625_v63 = vpop.f32.mrf.mxu0 }
  0xe5   :  { %v626_v31 = vadd.f32 %v2891_v10, %v625_v63 }
  0xe7   :  { %2304 = vmatmul.msk.f32.gmra.mxu0 %vm190_vm0, %v83_v0  ;;  %1400 = vmatmul.f32.gmra.mxu2 %v983_v1  ;;  %v987_v34 = vmax.f32 %v626_v31, 0.0  ;;  %v174_v0 = vld [vmem:[%s4171_s0 + $0x3b0] sm:$0xff]  ;;  %v3122_v4 = vpop.f32.mrf.mxu1 }
  0xe8   :  { %2395 = vmatmul.msk.f32.gmra.mxu3 %vm190_vm0, %v174_v0  ;;  %v2431_v0 = vld [vmem:[%s4174_s3 + $0x150] sm:$0xff] }
  0xea   :  { %v3125_v7 = vpop.f32.mrf.mxu2 }
  0xec   :  { %v628_v11 = vpop.f32.mrf.mxu0 }
  0xed   :  { %v629_v38 = vadd.f32 %v2891_v10, %v628_v11  ;;  %v175_v11 = vld [vmem:[%s4171_s0 + $0x3b8] sm:$0xff] }
  0xef   :  { %2305 = vmatmul.msk.f32.gmra.mxu0 %vm190_vm0, %v84_v12  ;;  %1403 = vmatmul.f32.gmra.mxu2 %v984_v13  ;;  %v988_v41 = vmax.f32 %v629_v38, 0.0  ;;  %v92_v13 = vld [vmem:[%s4171_s0 + $0x120] sm:$0xff]  ;;  %v3136_v15 = vpop.f32.mrf.mxu1 }
  0xf0   :  { %2396 = vmatmul.msk.f32.gmra.mxu3 %vm190_vm0, %v175_v11  ;;  %v182_v11 = vld [vmem:[%s4171_s0 + $0x3f0] sm:$0xff] }
  0xf4   :  { %v631_v18 = vpop.f32.mrf.mxu0 }
  0xf5   :  { %v632_v46 = vadd.f32 %v2891_v10, %v631_v18 }
  0xf7   :  { %2306 = vmatmul.msk.f32.gmra.mxu0 %vm190_vm0, %v85_v19  ;;  %1406 = vmatmul.f32.gmra.mxu2 %v985_v21  ;;  %v989_v51 = vmax.f32 %v632_v46, 0.0  ;;  %v93_v19 = vld [vmem:[%s4171_s0 + $0x128] sm:$0xff] }
  0xf8   :  { %2397 = vmatmul.msk.f32.gmra.mxu3 %vm190_vm0, %v176_v17  ;;  %v99_v17 = vld [vmem:[%s4171_s0 + $0x158] sm:$0xff] }
  0xfc   :  { %v634_v25 = vpop.f32.mrf.mxu0 }
  0xfd   :  { %v635_v55 = vadd.f32 %v2891_v10, %v634_v25  ;;  %v3152_v25 = vpop.f32.mrf.mxu1 }
  0xff   :  { %2307 = vmatmul.msk.f32.gmra.mxu0 %vm190_vm0, %v86_v26  ;;  %1409 = vmatmul.f32.gmra.mxu2 %v986_v27  ;;  %v990_v61 = vmax.f32 %v635_v55, 0.0  ;;  %v94_v27 = vld [vmem:[%s4171_s0 + $0x130] sm:$0xff]  ;;  %v2434_v55 = vld [vmem:[%s4174_s3 + $0x168] sm:$0xff] }
 0x100   :  { %2398 = vmatmul.msk.f32.gmra.mxu3 %vm190_vm0, %v177_v24  ;;  %v183_v24 = vld [vmem:[%s4171_s0 + $0x3f8] sm:$0xff] }
 0x104   :  { %v637_v32 = vpop.f32.mrf.mxu0 }
 0x105   :  { %v638_v1 = vadd.f32 %v2891_v10, %v637_v32  ;;  %v178_v32 = vld [vmem:[%s4171_s0 + $0x3d0] sm:$0xff] }
 0x107   :  { %2308 = vmatmul.msk.f32.gmra.mxu0 %vm190_vm0, %v87_v33  ;;  %1412 = vmatmul.f32.gmra.mxu2 %v987_v34  ;;  %v991_v5 = vmax.f32 %v638_v1, 0.0  ;;  %v3163_v33 = vpop.f32.mrf.mxu1 }
 0x108   :  { %2399 = vmatmul.msk.f32.gmra.mxu3 %vm190_vm0, %v178_v32  ;;  %v100_v32 = vld [vmem:[%s4171_s0 + $0x160] sm:$0xff] }
 0x10c   :  { %v640_v39 = vpop.f32.mrf.mxu0 }
 0x10d   :  { %v641_v42 = vadd.f32 %v2891_v10, %v640_v39 }
 0x10f   :  { %v992_v43 = vmax.f32 %v641_v42, 0.0  ;;  %2309 = vmatmul.msk.f32.gmra.mxu0 %vm190_vm0, %v88_v40  ;;  %1415 = vmatmul.f32.gmra.mxu2 %v988_v41  ;;  %v179_v40 = vld [vmem:[%s4171_s0 + $0x3d8] sm:$0xff]  ;;  %v96_v42 = vld [vmem:[%s4171_s0 + $0x140] sm:$0xff] }
 0x110   :  { %2400 = vmatmul.msk.f32.gmra.mxu3 %vm190_vm0, %v179_v40 }
 0x111   :  { %1314 = vmatmul.f32.vlgmr.msrb.gmra.mxu1 %v992_v43  ;;  %v3177_v43 = vpop.f32.mrf.mxu1 }
 0x114   :  { %v643_v49 = vpop.f32.mrf.mxu0 }
 0x115   :  { %v644_v52 = vadd.f32 %v2891_v10, %v643_v49  ;;  %v180_v49 = vld [vmem:[%s4171_s0 + $0x3e0] sm:$0xff] }
 0x117   :  { %2310 = vmatmul.msk.f32.gmra.mxu0 %vm190_vm0, %v89_v50  ;;  %1418 = vmatmul.f32.gmra.mxu2 %v989_v51  ;;  %v993_v53 = vmax.f32 %v644_v52, 0.0  ;;  %v2436_v50 = vld [vmem:[%s4174_s3 + $0x178] sm:$0xff]  ;;  %v2435_v51 = vld [vmem:[%s4174_s3 + $0x170] sm:$0xff] }
 0x118   :  { %2401 = vmatmul.msk.f32.gmra.mxu3 %vm190_vm0, %v180_v49 }
 0x119   :  { %1317 = vmatmul.f32.gmra.mxu1 %v993_v53  ;;  %1462 = vmatpush.msrb.mxu3 %v2436_v50  ;;  %v97_v53 = vld [vmem:[%s4171_s0 + $0x148] sm:$0xff]  ;;  %v102_v50 = vld [vmem:[%s4171_s0 + $0x170] sm:$0xff] }
 0x11b   :  { %1463 = vmatpush.msrb.mxu3 %v2435_v51 }
 0x11c   :  { %v646_v57 = vpop.f32.mrf.mxu0 }
 0x11d   :  { %v647_v62 = vadd.f32 %v2891_v10, %v646_v57  ;;  %1464 = vmatpush.msrb.mxu3 %v2434_v55  ;;  %v3198_v57 = vpop.f32.mrf.mxu1  ;;  %v103_v55 = vld [vmem:[%s4171_s0 + $0x178] sm:$0xff] }
 0x11f   :  { %2311 = vmatmul.msk.f32.gmra.mxu0 %vm190_vm0, %v90_v58  ;;  %1421 = vmatmul.f32.gmra.mxu2 %v990_v61  ;;  %v994_v63 = vmax.f32 %v647_v62, 0.0  ;;  %v2433_v61 = vld [vmem:[%s4174_s3 + $0x160] sm:$0xff]  ;;  %v181_v62 = vld [vmem:[%s4171_s0 + $0x3e8] sm:$0xff] }
 0x120   :  { %1465 = vmatpush.msrb.mxu3 %v2433_v61 }
 0x121   :  { %1320 = vmatmul.f32.gmra.mxu1 %v994_v63  ;;  %2402 = vmatmul.msk.f32.gmra.mxu3 %vm190_vm0, %v181_v62  ;;  %v2432_v63 = vld [vmem:[%s4174_s3 + $0x158] sm:$0xff] }
 0x122   :  { %1466 = vmatpush.msrb.mxu3 %v2432_v63 }
 0x124   :  { %v649_v2 = vpop.f32.mrf.mxu0  ;;  %1467 = vmatpush.msrb.mxu3 %v2431_v0  ;;  %v104_v0 = vld [vmem:[%s4171_s0 + $0x180] sm:$0xff] }
 0x125   :  { %v650_v6 = vadd.f32 %v2891_v10, %v649_v2  ;;  %v98_v2 = vld [vmem:[%s4171_s0 + $0x150] sm:$0xff] }
 0x127   :  { %v995_v9 = vmax.f32 %v650_v6, 0.0  ;;  %2312 = vmatmul.msk.f32.gmra.mxu0 %vm190_vm0, %v91_v3  ;;  %1424 = vmatmul.f32.gmra.mxu2 %v991_v5  ;;  %v2430_v5 = vld [vmem:[%s4174_s3 + $0x148] sm:$0xff] }
 0x128   :  { %1468 = vmatpush.msrb.mxu3 %v2430_v5  ;;  %v105_v5 = vld [vmem:[%s4171_s0 + $0x188] sm:$0xff] }
 0x129   :  { %1323 = vmatmul.f32.gmra.mxu1 %v995_v9  ;;  %v2429_v9 = vld [vmem:[%s4174_s3 + $0x140] sm:$0xff]  ;;  %2403 = vmatmul.msk.f32.gmra.mxu3 %vm190_vm0, %v182_v11  ;;  %v3302_v11 = vpop.f32.mrf.mxu3 }
 0x12a   :  { %1469 = vmatpush.msrb.mxu3 %v2429_v9 }
 0x12c   :  { %v652_v12 = vpop.f32.mrf.mxu0 }
 0x12d   :  { %v653_v14 = vadd.f32 %v2891_v10, %v652_v12  ;;  %v3228_v12 = vpop.f32.mrf.mxu1 }
 0x12f   :  { %v996_v16 = vmax.f32 %v653_v14, 0.0  ;;  %2313 = vmatmul.msk.f32.gmra.mxu0 %vm190_vm0, %v92_v13  ;;  %v2428_v13 = vld [vmem:[%s4174_s3 + $0x138] sm:$0xff]  ;;  %v2427_v14 = vld [vmem:[%s4174_s3 + $0x130] sm:$0xff] }
 0x130   :  { %1470 = vmatpush.msrb.mxu3 %v2428_v13 }
 0x131   :  { %1326 = vmatmul.f32.gmra.mxu1 %v996_v16  ;;  %2404 = vmatmul.msk.f32.gmra.mxu3 %vm190_vm0, %v183_v24 }
 0x132   :  { %1471 = vmatpush.msrb.mxu3 %v2427_v14  ;;  %v106_v14 = vld [vmem:[%s4171_s0 + $0x190] sm:$0xff] }
 0x134   :  { %v655_v18 = vpop.f32.mrf.mxu0 }
 0x135   :  { %v656_v21 = vadd.f32 %v2891_v10, %v655_v18 }
 0x137   :  { %v997_v23 = vmax.f32 %v656_v21, 0.0  ;;  %2314 = vmatmul.msk.f32.gmra.mxu0 %vm190_vm0, %v93_v19  ;;  %v2426_v19 = vld [vmem:[%s4174_s3 + $0x128] sm:$0xff] }
 0x138   :  { %1472 = vmatpush.msrb.mxu3 %v2426_v19 }
 0x139   :  { %1329 = vmatmul.f32.gmra.mxu1 %v997_v23  ;;  %v2425_v23 = vld [vmem:[%s4174_s3 + $0x120] sm:$0xff] }
 0x13a   :  { %1473 = vmatpush.msrb.mxu3 %v2425_v23 }
 0x13c   :  { %v658_v26 = vpop.f32.mrf.mxu0 }
 0x13d   :  { %v659_v30 = vadd.f32 %v2891_v10, %v658_v26  ;;  %v2424_v26 = vld [vmem:[%s4174_s3 + $0x118] sm:$0xff] }
 0x13e   :  { %1474 = vmatpush.msrb.mxu3 %v2424_v26 }
 0x13f   :  { %v998_v31 = vmax.f32 %v659_v30, 0.0  ;;  %2315 = vmatmul.msk.f32.gmra.mxu0 %vm190_vm0, %v94_v27  ;;  %v3255_v27 = vpop.f32.mrf.mxu1  ;;  %v2423_v30 = vld [vmem:[%s4174_s3 + $0x110] sm:$0xff] }
 0x140   :  { %1475 = vmatpush.msrb.mxu3 %v2423_v30  ;;  %v108_v30 = vld [vmem:[%s4171_s0 + $0x1a0] sm:$0xff] }
 0x141   :  { %1332 = vmatmul.f32.gmra.mxu1 %v998_v31 }
 0x144   :  { %v661_v34 = vpop.f32.mrf.mxu0 }
 0x145   :  { %v662_v38 = vadd.f32 %v2891_v10, %v661_v34 }
 0x147   :  { %v999_v39 = vmax.f32 %v662_v38, 0.0  ;;  %2316 = vmatmul.msk.f32.gmra.mxu0 %vm190_vm0, %v95_v35  ;;  %v2422_v35 = vld [vmem:[%s4174_s3 + $0x108] sm:$0xff] }
 0x148   :  { %1476 = vmatpush.msrb.mxu3 %v2422_v35 }
 0x149   :  { %1335 = vmatmul.f32.gmra.mxu1 %v999_v39  ;;  %v2421_v39 = vld [vmem:[%s4174_s3 + $0x100] sm:$0xff] }
 0x14a   :  { %1477 = vmatpush.msrb.mxu3 %v2421_v39 }
 0x14c   :  { %v664_v41 = vpop.f32.mrf.mxu0 }
 0x14d   :  { %v665_v44 = vadd.f32 %v2891_v10, %v664_v41  ;;  %v101_v41 = vld [vmem:[%s4171_s0 + $0x168] sm:$0xff] }
 0x14f   :  { %v1000_v46 = vmax.f32 %v665_v44, 0.0  ;;  %2317 = vmatmul.msk.f32.gmra.mxu0 %vm190_vm0, %v96_v42  ;;  %v3274_v42 = vpop.f32.mrf.mxu1 }
 0x151   :  { %1338 = vmatmul.f32.gmra.mxu1 %v1000_v46 }
 0x154   :  { %v667_v52 = vpop.f32.mrf.mxu0 }
 0x155   :  { %v668_v54 = vadd.f32 %v2891_v10, %v667_v52 }
 0x157   :  { %v1001_v58 = vmax.f32 %v668_v54, 0.0  ;;  %2318 = vmatmul.msk.f32.gmra.mxu0 %vm190_vm0, %v97_v53  ;;  %v3282_v52 = vpop.f32.mrf.mxu1 }
 0x159   :  { %1341 = vmatmul.f32.gmra.mxu1 %v1001_v58 }
 0x15c   :  { %v670_v1 = vpop.f32.mrf.mxu0 }
 0x15d   :  { %v671_v3 = vadd.f32 %v2891_v10, %v670_v1 }
 0x15f   :  { %v1002_v6 = vmax.f32 %v671_v3, 0.0  ;;  %2319 = vmatmul.msk.f32.gmra.mxu0 %vm190_vm0, %v98_v2  ;;  %v3290_v62 = vpop.f32.mrf.mxu1 }
 0x161   :  { %1344 = vmatmul.f32.gmra.mxu1 %v1002_v6 }
 0x164   :  { %v673_v16 = vpop.f32.mrf.mxu0 }
 0x165   :  { %v674_v18 = vadd.f32 %v2891_v10, %v673_v16 }
 0x167   :  { %v1003_v21 = vmax.f32 %v674_v18, 0.0  ;;  %2320 = vmatmul.msk.f32.gmra.mxu0 %vm190_vm0, %v99_v17  ;;  %v3309_v18 = vpop.f32.mrf.mxu3 }
 0x169   :  { %1347 = vmatmul.f32.gmra.mxu1 %v1003_v21  ;;  %v107_v21 = vld [vmem:[%s4171_s0 + $0x198] sm:$0xff] }
 0x16c   :  { %v676_v31 = vpop.f32.mrf.mxu0 }
 0x16d   :  { %v677_v34 = vadd.f32 %v2891_v10, %v676_v31 }
 0x16f   :  { %v1004_v38 = vmax.f32 %v677_v34, 0.0  ;;  %2321 = vmatmul.msk.f32.gmra.mxu0 %vm190_vm0, %v100_v32  ;;  %v3319_v31 = vpop.f32.mrf.mxu3 }
 0x171   :  { %1350 = vmatmul.f32.gmra.mxu1 %v1004_v38  ;;  %v109_v38 = vld [vmem:[%s4171_s0 + $0x1a8] sm:$0xff] }
 0x174   :  { %v679_v40 = vpop.f32.mrf.mxu0 }
 0x175   :  { %v680_v44 = vadd.f32 %v2891_v10, %v679_v40 }
 0x177   :  { %v1005_v46 = vmax.f32 %v680_v44, 0.0  ;;  %2322 = vmatmul.msk.f32.gmra.mxu0 %vm190_vm0, %v101_v41  ;;  %v3327_v40 = vpop.f32.mrf.mxu3 }
 0x179   :  { %1353 = vmatmul.f32.gmra.mxu1 %v1005_v46  ;;  %v110_v46 = vld [vmem:[%s4171_s0 + $0x1b0] sm:$0xff] }
 0x17c   :  { %v682_v49 = vpop.f32.mrf.mxu0 }
 0x17d   :  { %v683_v51 = vadd.f32 %v2891_v10, %v682_v49 }
 0x17f   :  { %v1006_v53 = vmax.f32 %v683_v51, 0.0  ;;  %2323 = vmatmul.msk.f32.gmra.mxu0 %vm190_vm0, %v102_v50  ;;  %v3335_v51 = vpop.f32.mrf.mxu3 }
 0x181   :  { %1356 = vmatmul.f32.gmra.mxu1 %v1006_v53 }
 0x184   :  { %v685_v54 = vpop.f32.mrf.mxu0 }
 0x185   :  { %v686_v58 = vadd.f32 %v2891_v10, %v685_v54  ;;  %v111_v54 = vld [vmem:[%s4171_s0 + $0x1b8] sm:$0xff] }
 0x187   :  { %v1007_v61 = vmax.f32 %v686_v58, 0.0  ;;  %2324 = vmatmul.msk.f32.gmra.mxu0 %vm190_vm0, %v103_v55 }
 0x189   :  { %1359 = vmatmul.f32.gmra.mxu1 %v1007_v61  ;;  %v3342_v61 = vpop.f32.mrf.mxu3 }
 0x18c   :  { %v688_v63 = vpop.f32.mrf.mxu0 }
 0x18d   :  { %v689_v1 = vadd.f32 %v2891_v10, %v688_v63 }
 0x18f   :  { %v1008_v2 = vmax.f32 %v689_v1, 0.0  ;;  %2325 = vmatmul.msk.f32.gmra.mxu0 %vm190_vm0, %v104_v0  ;;  %v112_v0 = vld [vmem:[%s4171_s0 + $0x1c0] sm:$0xff] }
 0x191   :  { %1478 = vmatmul.f32.vlgmr.msrb.gmra.mxu3 %v1008_v2 }
 0x194   :  { %v691_v3 = vpop.f32.mrf.mxu0 }
 0x195   :  { %v692_v6 = vadd.f32 %v2891_v10, %v691_v3  ;;  %v2452_v3 = vld [vmem:[%s4174_s3 + $0x1f8] sm:$0xff] }
 0x196   :  { %1577 = vmatpush.msra.mxu1 %v2452_v3 }
 0x197   :  { %2326 = vmatmul.msk.f32.gmra.mxu0 %vm190_vm0, %v105_v5  ;;  %v1009_v9 = vmax.f32 %v692_v6, 0.0  ;;  %v2484_v5 = vld [vmem:[%s4174_s3 + $0x2f8] sm:$0xff]  ;;  %v2451_v6 = vld [vmem:[%s4174_s3 + $0x1f0] sm:$0xff] }
 0x198   :  { %1807 = vmatpush.msra.mxu3 %v2484_v5  ;;  %1578 = vmatpush.msra.mxu1 %v2451_v6  ;;  %v115_v5 = vld [vmem:[%s4171_s0 + $0x1d8] sm:$0xff] }
 0x199   :  { %1481 = vmatmul.f32.gmra.mxu3 %v1009_v9  ;;  %v2483_v9 = vld [vmem:[%s4174_s3 + $0x2f0] sm:$0xff] }
 0x19a   :  { %1808 = vmatpush.msra.mxu3 %v2483_v9  ;;  %v2442_v9 = vld [vmem:[%s4174_s3 + $0x1a8] sm:$0xff] }
 0x19c   :  { %v694_v13 = vpop.f32.mrf.mxu0 }
 0x19d   :  { %v695_v16 = vadd.f32 %v2891_v10, %v694_v13 }
 0x19f   :  { %2327 = vmatmul.msk.f32.gmra.mxu0 %vm190_vm0, %v106_v14  ;;  %v1010_v17 = vmax.f32 %v695_v16, 0.0  ;;  %v113_v14 = vld [vmem:[%s4171_s0 + $0x1c8] sm:$0xff]  ;;  %v3364_v16 = vpop.f32.mrf.mxu1 }
 0x1a1   :  { %1484 = vmatmul.f32.gmra.mxu3 %v1010_v17  ;;  %v3366_v17 = vpop.f32.mrf.mxu3 }
 0x1a4   :  { %v697_v19 = vpop.f32.mrf.mxu0 }
 0x1a5   :  { %v698_v23 = vadd.f32 %v2891_v10, %v697_v19 }
 0x1a7   :  { %2328 = vmatmul.msk.f32.gmra.mxu0 %vm190_vm0, %v107_v21  ;;  %v1011_v24 = vmax.f32 %v698_v23, 0.0  ;;  %v2450_v21 = vld [vmem:[%s4174_s3 + $0x1e8] sm:$0xff] }
 0x1a8   :  { %v2482_v23 = vld [vmem:[%s4174_s3 + $0x2e8] sm:$0xff]  ;;  %1579 = vmatpush.msra.mxu1 %v2450_v21  ;;  %v2473_v21 = vld [vmem:[%s4174_s3 + $0x2a0] sm:$0xff] }
 0x1a9   :  { %1487 = vmatmul.f32.gmra.mxu3 %v1011_v24 }
 0x1aa   :  { %1809 = vmatpush.msra.mxu3 %v2482_v23 }
 0x1ac   :  { %v700_v26 = vpop.f32.mrf.mxu0 }
 0x1ad   :  { %v701_v32 = vadd.f32 %v2891_v10, %v700_v26  ;;  %v2449_v26 = vld [vmem:[%s4174_s3 + $0x1e0] sm:$0xff] }
 0x1ae   :  { %1580 = vmatpush.msra.mxu1 %v2449_v26  ;;  %v2440_v26 = vld [vmem:[%s4174_s3 + $0x198] sm:$0xff] }
 0x1af   :  { %2329 = vmatmul.msk.f32.gmra.mxu0 %vm190_vm0, %v108_v30  ;;  %v1012_v34 = vmax.f32 %v701_v32, 0.0  ;;  %v2481_v30 = vld [vmem:[%s4174_s3 + $0x2e0] sm:$0xff]  ;;  %v2448_v32 = vld [vmem:[%s4174_s3 + $0x1d8] sm:$0xff] }
 0x1b0   :  { %1810 = vmatpush.msra.mxu3 %v2481_v30  ;;  %1581 = vmatpush.msra.mxu1 %v2448_v32  ;;  %v2472_v30 = vld [vmem:[%s4174_s3 + $0x298] sm:$0xff]  ;;  %v2439_v32 = vld [vmem:[%s4174_s3 + $0x190] sm:$0xff] }
 0x1b1   :  { %1490 = vmatmul.f32.gmra.mxu3 %v1012_v34  ;;  %v2480_v34 = vld [vmem:[%s4174_s3 + $0x2d8] sm:$0xff] }
 0x1b2   :  { %1811 = vmatpush.msra.mxu3 %v2480_v34  ;;  %v2471_v34 = vld [vmem:[%s4174_s3 + $0x290] sm:$0xff] }
 0x1b4   :  { %v703_v35 = vpop.f32.mrf.mxu0 }
 0x1b5   :  { %v704_v39 = vadd.f32 %v2891_v10, %v703_v35  ;;  %v2447_v35 = vld [vmem:[%s4174_s3 + $0x1d0] sm:$0xff] }
 0x1b6   :  { %1582 = vmatpush.msra.mxu1 %v2447_v35 }
 0x1b7   :  { %2330 = vmatmul.msk.f32.gmra.mxu0 %vm190_vm0, %v109_v38  ;;  %v1013_v41 = vmax.f32 %v704_v39, 0.0  ;;  %v2479_v38 = vld [vmem:[%s4174_s3 + $0x2d0] sm:$0xff] }
 0x1b8   :  { %1812 = vmatpush.msra.mxu3 %v2479_v38  ;;  %v116_v38 = vld [vmem:[%s4171_s0 + $0x1e0] sm:$0xff] }
 0x1b9   :  { %1493 = vmatmul.f32.gmra.mxu3 %v1013_v41  ;;  %v114_v41 = vld [vmem:[%s4171_s0 + $0x1d0] sm:$0xff] }
 0x1bc   :  { %v706_v44 = vpop.f32.mrf.mxu0 }
 0x1bd   :  { %v707_v49 = vadd.f32 %v2891_v10, %v706_v44 }
 0x1bf   :  { %2331 = vmatmul.msk.f32.gmra.mxu0 %vm190_vm0, %v110_v46  ;;  %v1014_v50 = vmax.f32 %v707_v49, 0.0  ;;  %v2446_v46 = vld [vmem:[%s4174_s3 + $0x1c8] sm:$0xff] }
 0x1c0   :  { %v2478_v49 = vld [vmem:[%s4174_s3 + $0x2c8] sm:$0xff]  ;;  %1583 = vmatpush.msra.mxu1 %v2446_v46 }
 0x1c1   :  { %1496 = vmatmul.f32.gmra.mxu3 %v1014_v50  ;;  %v3404_v50 = vpop.f32.mrf.mxu1 }
 0x1c2   :  { %1813 = vmatpush.msra.mxu3 %v2478_v49  ;;  %v2437_v49 = vld [vmem:[%s4174_s3 + $0x180] sm:$0xff] }
 0x1c4   :  { %v709_v53 = vpop.f32.mrf.mxu0 }
 0x1c5   :  { %v710_v55 = vadd.f32 %v2891_v10, %v709_v53  ;;  %v3406_v53 = vpop.f32.mrf.mxu3 }
 0x1c7   :  { %v1015_v58 = vmax.f32 %v710_v55, 0.0  ;;  %2332 = vmatmul.msk.f32.gmra.mxu0 %vm190_vm0, %v111_v54  ;;  %v2445_v55 = vld [vmem:[%s4174_s3 + $0x1c0] sm:$0xff] }
 0x1c8   :  { %1584 = vmatpush.msra.mxu1 %v2445_v55  ;;  %v2468_v55 = vld [vmem:[%s4174_s3 + $0x278] sm:$0xff] }
 0x1c9   :  { %1499 = vmatmul.f32.gmra.mxu3 %v1015_v58  ;;  %v2477_v58 = vld [vmem:[%s4174_s3 + $0x2c0] sm:$0xff]  ;;  %v3444_v23 = vpop.f32.mrf.mxu1  ;;  %1692 = vmatpush.msra.mxu2 %v2468_v55 }
 0x1ca   :  { %1814 = vmatpush.msra.mxu3 %v2477_v58  ;;  %v3524_v55 = vld [vmem:[%s4173_s2] ss:$0 sm:$0xff] }
 0x1cc   :  { %v712_v63 = vpop.f32.mrf.mxu0 }
 0x1cd   :  { %v713_v1 = vadd.f32 %v2891_v10, %v712_v63  ;;  %v2444_v63 = vld [vmem:[%s4174_s3 + $0x1b8] sm:$0xff] }
 0x1ce   :  { %1585 = vmatpush.msra.mxu1 %v2444_v63 }
 0x1cf   :  { %v1016_v2 = vmax.f32 %v713_v1, 0.0  ;;  %2333 = vmatmul.msk.f32.gmra.mxu0 %vm190_vm0, %v112_v0  ;;  %v2476_v0 = vld [vmem:[%s4174_s3 + $0x2b8] sm:$0xff]  ;;  %v2443_v1 = vld [vmem:[%s4174_s3 + $0x1b0] sm:$0xff] }
 0x1d0   :  { %1815 = vmatpush.msra.mxu3 %v2476_v0  ;;  %1586 = vmatpush.msra.mxu1 %v2443_v1  ;;  %v117_v1 = vld [vmem:[%s4171_s0 + $0x1e8] sm:$0xff] }
 0x1d1   :  { %1502 = vmatmul.f32.gmra.mxu3 %v1016_v2  ;;  %v2475_v2 = vld [vmem:[%s4174_s3 + $0x2b0] sm:$0xff]  ;;  %v3480_v58 = vpop.f32.mrf.mxu1 }
 0x1d2   :  { %1816 = vmatpush.msra.mxu3 %v2475_v2  ;;  %1587 = vmatpush.msra.mxu1 %v2442_v9  ;;  %v118_v9 = vld [vmem:[%s4171_s0 + $0x1f0] sm:$0xff] }
 0x1d4   :  { %v715_v13 = vpop.f32.mrf.mxu0 }
 0x1d5   :  { %v716_v19 = vadd.f32 %v2891_v10, %v715_v13  ;;  %v2474_v13 = vld [vmem:[%s4174_s3 + $0x2a8] sm:$0xff] }
 0x1d6   :  { %1817 = vmatpush.msra.mxu3 %v2474_v13 }
 0x1d7   :  { %v1017_v24 = vmax.f32 %v716_v19, 0.0  ;;  %2334 = vmatmul.msk.f32.gmra.mxu0 %vm190_vm0, %v113_v14  ;;  %v2441_v19 = vld [vmem:[%s4174_s3 + $0x1a0] sm:$0xff] }
 0x1d8   :  { %1588 = vmatpush.msra.mxu1 %v2441_v19  ;;  %1818 = vmatpush.msra.mxu3 %v2473_v21 }
 0x1d9   :  { %1505 = vmatmul.f32.gmra.mxu3 %v1017_v24  ;;  %v3446_v24 = vpop.f32.mrf.mxu3  ;;  %v3495_v13 = vpop.f32.mrf.mxu1 }
 0x1da   :  { %1589 = vmatpush.msra.mxu1 %v2440_v26  ;;  %1819 = vmatpush.msra.mxu3 %v2472_v30  ;;  %v2466_v26 = vld [vmem:[%s4174_s3 + $0x268] sm:$0xff] }
 0x1dc   :  { %v718_v39 = vpop.f32.mrf.mxu0  ;;  %1590 = vmatpush.msra.mxu1 %v2439_v32  ;;  %1820 = vmatpush.msra.mxu3 %v2471_v34  ;;  %v119_v32 = vld [vmem:[%s4171_s0 + $0x1f8] sm:$0xff] }
 0x1dd   :  { %v719_v44 = vadd.f32 %v2891_v10, %v718_v39 }
 0x1df   :  { %v1018_v54 = vmax.f32 %v719_v44, 0.0  ;;  %2335 = vmatmul.msk.f32.gmra.mxu0 %vm190_vm0, %v114_v41  ;;  %v2438_v41 = vld [vmem:[%s4174_s3 + $0x188] sm:$0xff] }
 0x1e0   :  { %v2470_v44 = vld [vmem:[%s4174_s3 + $0x288] sm:$0xff]  ;;  %1591 = vmatpush.msra.mxu1 %v2438_v41  ;;  %v833_v41 = vadd.f32 %v2891_v10, %v3274_v42  ;;  %v836_v42 = vadd.f32 %v3524_v55, %v3282_v52 }
 0x1e1   :  { %1508 = vmatmul.f32.gmra.mxu3 %v1018_v54  ;;  %v2469_v54 = vld [vmem:[%s4174_s3 + $0x280] sm:$0xff]  ;;  %v3482_v63 = vpop.f32.mrf.mxu3 }
 0x1e2   :  { %1821 = vmatpush.msra.mxu3 %v2470_v44  ;;  %1592 = vmatpush.msra.mxu1 %v2437_v49  ;;  %4179 = vst [vmem:[#allocation9_spill] sm:$0xff] %v3482_v63  ;;  %v2465_v44 = vld [vmem:[%s4174_s3 + $0x260] sm:$0xff] }
 0x1e3   :  { %v120_v49 = vld [vmem:[%s4171_s0 + $0x200] sm:$0xff] }
 0x1e4   :  { %v721_v3 = vpop.f32.mrf.mxu0  ;;  %1822 = vmatpush.msra.mxu3 %v2469_v54  ;;  %v1056_v54 = vmax.f32 %v833_v41, 0.0 }
 0x1e5   :  { %v722_v6 = vadd.f32 %v2891_v10, %v721_v3 }
 0x1e7   :  { %v1019_v14 = vmax.f32 %v722_v6, 0.0  ;;  %2336 = vmatmul.msk.f32.gmra.mxu0 %vm190_vm0, %v115_v5  ;;  %v2467_v5 = vld [vmem:[%s4174_s3 + $0x270] sm:$0xff] }
 0x1e8   :  { %1693 = vmatpush.msra.mxu2 %v2467_v5 }
 0x1e9   :  { %1511 = vmatmul.f32.gmra.mxu3 %v1019_v14  ;;  %v3497_v14 = vpop.f32.mrf.mxu3 }
 0x1ea   :  { %4180 = vst [vmem:[#allocation10_spill] sm:$0xff] %v3497_v14  ;;  %1694 = vmatpush.msra.mxu2 %v2466_v26  ;;  %v2463_v26 = vld [vmem:[%s4174_s3 + $0x250] sm:$0xff] }
 0x1ec   :  { %v724_v35 = vpop.f32.mrf.mxu0  ;;  %1695 = vmatpush.msra.mxu2 %v2465_v44 }
 0x1ed   :  { %v725_v39 = vadd.f32 %v2891_v10, %v724_v35  ;;  %v3508_v35 = vpop.f32.mrf.mxu1 }
 0x1ef   :  { %v1020_v46 = vmax.f32 %v725_v39, 0.0  ;;  %2337 = vmatmul.msk.f32.gmra.mxu0 %vm190_vm0, %v116_v38 }
 0x1f1   :  { %1514 = vmatmul.f32.gmra.mxu3 %v1020_v46  ;;  %v3510_v38 = vpop.f32.mrf.mxu3 }
 0x1f2   :  { %4181 = vst [vmem:[#allocation11_spill] sm:$0xff] %v3510_v38 }
 0x1f4   :  { %v727_v0 = vpop.f32.mrf.mxu0 }
 0x1f5   :  { %v728_v2 = vadd.f32 %v2891_v10, %v727_v0 }
 0x1f7   :  { %v1021_v3 = vmax.f32 %v728_v2, 0.0  ;;  %2338 = vmatmul.msk.f32.gmra.mxu0 %vm190_vm0, %v117_v1  ;;  %v3530_v1 = vpop.f32.mrf.mxu1 }
 0x1f9   :  { %1517 = vmatmul.f32.gmra.mxu3 %v1021_v3  ;;  %v3532_v2 = vpop.f32.mrf.mxu3  ;;  %v2464_v3 = vld [vmem:[%s4174_s3 + $0x258] sm:$0xff] }
 0x1fa   :  { %4182 = vst [vmem:[#allocation12_spill] sm:$0xff] %v3532_v2  ;;  %1696 = vmatpush.msra.mxu2 %v2464_v3 }
 0x1fc   :  { %v730_v6 = vpop.f32.mrf.mxu0  ;;  %1697 = vmatpush.msra.mxu2 %v2463_v26 }
 0x1fd   :  { %v731_v19 = vadd.f32 %v2891_v10, %v730_v6  ;;  %v121_v6 = vld [vmem:[%s4171_s0 + $0x208] sm:$0xff] }
 0x1ff   :  { %v1022_v21 = vmax.f32 %v731_v19, 0.0  ;;  %2339 = vmatmul.msk.f32.gmra.mxu0 %vm190_vm0, %v118_v9  ;;  %v1057_v9 = vmax.f32 %v836_v42, 0.0 }
 0x201   :  { %1520 = vmatmul.f32.gmra.mxu3 %v1022_v21  ;;  %v839_v21 = vadd.f32 %v3524_v55, %v3290_v62 }
 0x203   :  { %v1058_v41 = vmax.f32 %v839_v21, 0.0  ;;  %v124_v21 = vld [vmem:[%s4171_s0 + $0x220] sm:$0xff] }
 0x204   :  { %v733_v30 = vpop.f32.mrf.mxu0 }
 0x205   :  { %v734_v34 = vadd.f32 %v2891_v10, %v733_v30  ;;  %v3547_v30 = vpop.f32.mrf.mxu1 }
 0x207   :  { %v1023_v39 = vmax.f32 %v734_v34, 0.0  ;;  %2340 = vmatmul.msk.f32.gmra.mxu0 %vm190_vm0, %v119_v32  ;;  %v3549_v32 = vpop.f32.mrf.mxu3 }
 0x208   :  { %4183 = vst [vmem:[#allocation13_spill] sm:$0xff] %v3549_v32 }
 0x209   :  { %1523 = vmatmul.f32.gmra.mxu3 %v1023_v39  ;;  %v122_v39 = vld [vmem:[%s4171_s0 + $0x210] sm:$0xff] }
 0x20c   :  { %v736_v46 = vpop.f32.mrf.mxu0 }
 0x20d   :  { %v737_v0 = vadd.f32 %v3524_v55, %v736_v46  ;;  %v842_v46 = vadd.f32 %v3524_v55, %v3364_v16  ;;  %v3564_v42 = vpop.f32.mrf.mxu1  ;;  %v3569_v16 = vpop.f32.mrf.mxu2 }
 0x20f   :  { %v1024_v10 = vmax.f32 %v737_v0, 0.0  ;;  %2341 = vmatmul.msk.f32.gmra.mxu0 %vm190_vm0, %v120_v49  ;;  %v2462_v49 = vld [vmem:[%s4174_s3 + $0x248] sm:$0xff]  ;;  %v123_v0 = vld [vmem:[%s4171_s0 + $0x218] sm:$0xff]  ;;  %v3566_v3 = vpop.f32.mrf.mxu3 }
 0x210   :  { %1698 = vmatpush.msra.mxu2 %v2462_v49  ;;  %4184 = vst [vmem:[#allocation14_spill] sm:$0xff] %v3566_v3 }
 0x211   :  { %1593 = vmatmul.f32.vlgmr.msra.gmra.mxu1 %v1024_v10  ;;  %1823 = vmatmul.f32.vlgmr.msra.gmra.mxu3 %v1056_v54  ;;  %v1059_v10 = vmax.f32 %v842_v46, 0.0  ;;  %v2460_v46 = vld [vmem:[%s4174_s3 + $0x238] sm:$0xff] }
 0x214   :  { %v739_v5 = vpop.f32.mrf.mxu0 }
 0x215   :  { %v740_v19 = vadd.f32 %v3524_v55, %v739_v5 }
 0x217   :  { %v1025_v52 = vmax.f32 %v740_v19, 0.0  ;;  %2342 = vmatmul.msk.f32.gmra.mxu0 %vm190_vm0, %v121_v6  ;;  %v2461_v19 = vld [vmem:[%s4174_s3 + $0x240] sm:$0xff] }
 0x218   :  { %1699 = vmatpush.msra.mxu2 %v2461_v19  ;;  %v2459_v19 = vld [vmem:[%s4174_s3 + $0x230] sm:$0xff] }
 0x219   :  { %1596 = vmatmul.f32.gmra.mxu1 %v1025_v52  ;;  %1826 = vmatmul.f32.gmra.mxu3 %v1057_v9  ;;  %v845_v9 = vadd.f32 %v3524_v55, %v3404_v50 }
 0x21a   :  { %1700 = vmatpush.msra.mxu2 %v2460_v46 }
 0x21b   :  { %v1060_v26 = vmax.f32 %v845_v9, 0.0 }
 0x21c   :  { %v742_v34 = vpop.f32.mrf.mxu0  ;;  %1701 = vmatpush.msra.mxu2 %v2459_v19  ;;  %v2457_v19 = vld [vmem:[%s4174_s3 + $0x220] sm:$0xff] }
 0x21d   :  { %v743_v44 = vadd.f32 %v3524_v55, %v742_v34 }
 0x21f   :  { %v1026_v62 = vmax.f32 %v743_v44, 0.0  ;;  %2343 = vmatmul.msk.f32.gmra.mxu0 %vm190_vm0, %v122_v39  ;;  %v3581_v39 = vpop.f32.mrf.mxu1  ;;  %v3586_v44 = vpop.f32.mrf.mxu2 }
 0x221   :  { %1599 = vmatmul.f32.gmra.mxu1 %v1026_v62  ;;  %1829 = vmatmul.f32.gmra.mxu3 %v1058_v41  ;;  %v3583_v41 = vpop.f32.mrf.mxu3  ;;  %v848_v62 = vadd.f32 %v3524_v55, %v3444_v23  ;;  %v851_v23 = vadd.f32 %v3524_v55, %v3480_v58  ;;  %v854_v58 = vadd.f32 %v3524_v55, %v3495_v13 }
 0x222   :  { %4185 = vst [vmem:[#allocation15_spill] sm:$0xff] %v3583_v41  ;;  %v857_v13 = vadd.f32 %v3524_v55, %v3508_v35  ;;  %v860_v35 = vadd.f32 %v3524_v55, %v3530_v1 }
 0x224   :  { %v745_v54 = vpop.f32.mrf.mxu0 }
 0x225   :  { %v746_v5 = vadd.f32 %v3524_v55, %v745_v54  ;;  %v125_v54 = vld [vmem:[%s4171_s0 + $0x228] sm:$0xff] }
 0x227   :  { %v1027_v6 = vmax.f32 %v746_v5, 0.0  ;;  %2344 = vmatmul.msk.f32.gmra.mxu0 %vm190_vm0, %v123_v0  ;;  %v1061_v0 = vmax.f32 %v848_v62, 0.0  ;;  %v2458_v62 = vld [vmem:[%s4174_s3 + $0x228] sm:$0xff] }
 0x228   :  { %1702 = vmatpush.msra.mxu2 %v2458_v62 }
 0x229   :  { %1602 = vmatmul.f32.gmra.mxu1 %v1027_v6  ;;  %1832 = vmatmul.f32.gmra.mxu3 %v1059_v10  ;;  %v3600_v6 = vpop.f32.mrf.mxu1  ;;  %v3602_v9 = vpop.f32.mrf.mxu3 }
 0x22a   :  { %4186 = vst [vmem:[#allocation16_spill] sm:$0xff] %v3602_v9  ;;  %1703 = vmatpush.msra.mxu2 %v2457_v19  ;;  %v1065_v19 = vmax.f32 %v860_v35, 0.0  ;;  %v863_v35 = vadd.f32 %v3524_v55, %v3547_v30 }
 0x22c   :  { %v748_v52 = vpop.f32.mrf.mxu0 }
 0x22d   :  { %v749_v34 = vadd.f32 %v3524_v55, %v748_v52  ;;  %v3607_v52 = vpop.f32.mrf.mxu2 }
 0x22f   :  { %v1028_v50 = vmax.f32 %v749_v34, 0.0  ;;  %2345 = vmatmul.msk.f32.gmra.mxu0 %vm190_vm0, %v124_v21 }
 0x231   :  { %1605 = vmatmul.f32.gmra.mxu1 %v1028_v50  ;;  %1835 = vmatmul.f32.gmra.mxu3 %v1060_v26  ;;  %v1062_v26 = vmax.f32 %v851_v23, 0.0  ;;  %v3615_v46 = vpop.f32.mrf.mxu1 }
 0x234   :  { %v751_v49 = vpop.f32.mrf.mxu0 }
 0x235   :  { %v752_v10 = vadd.f32 %v3524_v55, %v751_v49  ;;  %v3617_v49 = vpop.f32.mrf.mxu3 }
 0x237   :  { %v1029_v5 = vmax.f32 %v752_v10, 0.0  ;;  %2346 = vmatmul.msk.f32.gmra.mxu0 %vm190_vm0, %v125_v54  ;;  %v3619_v54 = vpop.f32.mrf.mxu2  ;;  %v1063_v10 = vmax.f32 %v854_v58, 0.0 }
 0x239   :  { %1608 = vmatmul.f32.gmra.mxu1 %v1029_v5  ;;  %1838 = vmatmul.f32.gmra.mxu3 %v1061_v0 }
 0x23c   :  { %v754_v21 = vpop.f32.mrf.mxu0 }
 0x23d   :  { %v755_v34 = vadd.f32 %v3524_v55, %v754_v21 }
 0x23f   :  { %v1030_v50 = vmax.f32 %v755_v34, 0.0  ;;  %v3627_v34 = vpop.f32.mrf.mxu1  ;;  %v3632_v62 = vpop.f32.mrf.mxu2 }
 0x241   :  { %1611 = vmatmul.f32.gmra.mxu1 %v1030_v50  ;;  %1841 = vmatmul.f32.gmra.mxu3 %v1062_v26  ;;  %v1064_v26 = vmax.f32 %v857_v13, 0.0  ;;  %v3629_v50 = vpop.f32.mrf.mxu3 }
 0x244   :  { %v757_v0 = vpop.f32.mrf.mxu0 }
 0x245   :  { %v758_v5 = vadd.f32 %v3524_v55, %v757_v0 }
 0x247   :  { %v1031_v23 = vmax.f32 %v758_v5, 0.0  ;;  %v2500_v5 = vld [vmem:[%s4174_s3 + $0x378] sm:$0xff] }
 0x248   :  { %1922 = vmatpush.msrb.mxu1 %v2500_v5  ;;  %v3656_v5 = vpop.f32.mrf.mxu2 }
 0x249   :  { %1614 = vmatmul.f32.gmra.mxu1 %v1031_v23  ;;  %1844 = vmatmul.f32.gmra.mxu3 %v1063_v10  ;;  %v2456_v10 = vld [vmem:[%s4174_s3 + $0x218] sm:$0xff]  ;;  %v2499_v23 = vld [vmem:[%s4174_s3 + $0x370] sm:$0xff] }
 0x24a   :  { %1704 = vmatpush.msra.mxu2 %v2456_v10  ;;  %1923 = vmatpush.msrb.mxu1 %v2499_v23  ;;  %v2497_v10 = vld [vmem:[%s4174_s3 + $0x360] sm:$0xff]  ;;  %v2455_v23 = vld [vmem:[%s4174_s3 + $0x210] sm:$0xff] }
 0x24c   :  { %v760_v21 = vpop.f32.mrf.mxu0  ;;  %1705 = vmatpush.msra.mxu2 %v2455_v23  ;;  %v2493_v23 = vld [vmem:[%s4174_s3 + $0x340] sm:$0xff] }
 0x24d   :  { %v761_v58 = vadd.f32 %v3524_v55, %v760_v21  ;;  %v2498_v21 = vld [vmem:[%s4174_s3 + $0x368] sm:$0xff] }
 0x24e   :  { %1924 = vmatpush.msrb.mxu1 %v2498_v21 }
 0x24f   :  { %v1032_v0 = vmax.f32 %v761_v58, 0.0  ;;  %v3651_v58 = vpop.f32.mrf.mxu3 }
 0x250   :  { %1925 = vmatpush.msrb.mxu1 %v2497_v10  ;;  %v1066_v10 = vmax.f32 %v863_v35, 0.0  ;;  %v2454_v35 = vld [vmem:[%s4174_s3 + $0x208] sm:$0xff] }
 0x251   :  { %1617 = vmatmul.f32.gmra.mxu1 %v1032_v0  ;;  %1847 = vmatmul.f32.gmra.mxu3 %v1064_v26  ;;  %v3649_v26 = vpop.f32.mrf.mxu1 }
 0x252   :  { %1706 = vmatpush.msra.mxu2 %v2454_v35  ;;  %v2489_v35 = vld [vmem:[%s4174_s3 + $0x320] sm:$0xff] }
 0x254   :  { %v763_v13 = vpop.f32.mrf.mxu0 }
 0x255   :  { %v764_v1 = vadd.f32 %v3524_v55, %v763_v13  ;;  %v2496_v13 = vld [vmem:[%s4174_s3 + $0x358] sm:$0xff] }
 0x256   :  { %1926 = vmatpush.msrb.mxu1 %v2496_v13 }
 0x257   :  { %v1033_v0 = vmax.f32 %v764_v1, 0.0  ;;  %v2495_v1 = vld [vmem:[%s4174_s3 + $0x350] sm:$0xff]  ;;  %v3678_v9 = vpop.f32.mrf.mxu3 }
 0x258   :  { %1927 = vmatpush.msrb.mxu1 %v2495_v1  ;;  %v2492_v1 = vld [vmem:[%s4174_s3 + $0x338] sm:$0xff] }
 0x259   :  { %1620 = vmatmul.f32.gmra.mxu1 %v1033_v0  ;;  %1850 = vmatmul.f32.gmra.mxu3 %v1065_v19  ;;  %v2494_v19 = vld [vmem:[%s4174_s3 + $0x348] sm:$0xff]  ;;  %v3676_v13 = vpop.f32.mrf.mxu1 }
 0x25a   :  { %1928 = vmatpush.msrb.mxu1 %v2494_v19  ;;  %v2491_v19 = vld [vmem:[%s4174_s3 + $0x330] sm:$0xff] }
 0x25c   :  { %v766_v21 = vpop.f32.mrf.mxu0  ;;  %1929 = vmatpush.msrb.mxu1 %v2493_v23  ;;  %v2490_v23 = vld [vmem:[%s4174_s3 + $0x328] sm:$0xff] }
 0x25d   :  { %v767_v30 = vadd.f32 %v3524_v55, %v766_v21  ;;  %v3686_v21 = vpop.f32.mrf.mxu2 }
 0x25e   :  { %1930 = vmatpush.msrb.mxu1 %v2492_v1  ;;  %v2488_v1 = vld [vmem:[%s4174_s3 + $0x318] sm:$0xff] }
 0x25f   :  { %v1034_v0 = vmax.f32 %v767_v30, 0.0  ;;  %v866_v30 = vadd.f32 %v3524_v55, %v2917_v22  ;;  %v2453_v22 = vld [vmem:[%s4174_s3 + $0x200] sm:$0xff] }
 0x260   :  { %1931 = vmatpush.msrb.mxu1 %v2491_v19  ;;  %1707 = vmatpush.msra.mxu2 %v2453_v22 }
 0x261   :  { %1623 = vmatmul.f32.gmra.mxu1 %v1034_v0  ;;  %1853 = vmatmul.f32.gmra.mxu3 %v1066_v10  ;;  %v1067_v41 = vmax.f32 %v866_v30, 0.0  ;;  %v869_v30 = vadd.f32 %v3524_v55, %v2929_v29  ;;  %v3708_v19 = vpop.f32.mrf.mxu1 }
 0x262   :  { %1932 = vmatpush.msrb.mxu1 %v2490_v23 }
 0x263   :  { %v1068_v29 = vmax.f32 %v869_v30, 0.0 }
 0x264   :  { %v769_v10 = vpop.f32.mrf.mxu0  ;;  %1933 = vmatpush.msrb.mxu1 %v2489_v35  ;;  %v2486_v35 = vld [vmem:[%s4174_s3 + $0x308] sm:$0xff] }
 0x265   :  { %v770_v0 = vadd.f32 %v3524_v55, %v769_v10  ;;  %v3710_v10 = vpop.f32.mrf.mxu3 }
 0x266   :  { %1934 = vmatpush.msrb.mxu1 %v2488_v1  ;;  %v2485_v1 = vld [vmem:[%s4174_s3 + $0x300] sm:$0xff] }
 0x267   :  { %v1035_v3 = vmax.f32 %v770_v0, 0.0 }
 0x269   :  { %1626 = vmatmul.f32.gmra.mxu1 %v1035_v3  ;;  %1856 = vmatmul.f32.gmra.mxu3 %v1067_v41  ;;  %v2487_v3 = vld [vmem:[%s4174_s3 + $0x310] sm:$0xff]  ;;  %v3715_v41 = vpop.f32.mrf.mxu2  ;;  %v3729_v2 = vpop.f32.mrf.mxu1 }
 0x26a   :  { %1935 = vmatpush.msrb.mxu1 %v2487_v3  ;;  %v2516_v3 = vld [vmem:[%s4174_s3 + $0x3f8] sm:$0xff]  ;;  %4187 = vst [vmem:[#allocation17_spill] sm:$0xff] %v3729_v2 }
 0x26b   :  { %2037 = vmatpush.msrb.mxu2 %v2516_v3 }
 0x26c   :  { %v772_v0 = vpop.f32.mrf.mxu0  ;;  %1936 = vmatpush.msrb.mxu1 %v2486_v35 }
 0x26d   :  { %v773_v23 = vadd.f32 %v3524_v55, %v772_v0  ;;  %v872_v0 = vadd.f32 %v3524_v55, %v2943_v37  ;;  %v3731_v30 = vpop.f32.mrf.mxu3  ;;  %v875_v37 = vadd.f32 %v3524_v55, %v2965_v47  ;;  %v878_v47 = vadd.f32 %v3524_v55, %v2995_v59 }
 0x26e   :  { %1937 = vmatpush.msrb.mxu1 %v2485_v1  ;;  %v881_v59 = vadd.f32 %v3524_v55, %v3027_v8 }
 0x26f   :  { %v1036_v22 = vmax.f32 %v773_v23, 0.0  ;;  %v1069_v1 = vmax.f32 %v872_v0, 0.0  ;;  %v1070_v14 = vmax.f32 %v875_v37, 0.0  ;;  %v1071_v37 = vmax.f32 %v878_v47, 0.0 }
 0x271   :  { %1629 = vmatmul.f32.gmra.mxu1 %v1036_v22  ;;  %1859 = vmatmul.f32.gmra.mxu3 %v1068_v29  ;;  %v3734_v35 = vpop.f32.mrf.mxu2  ;;  %v2515_v29 = vld [vmem:[%s4174_s3 + $0x3f0] sm:$0xff]  ;;  %v3742_v2 = vpop.f32.mrf.mxu1 }
 0x272   :  { %2038 = vmatpush.msrb.mxu2 %v2515_v29  ;;  %4188 = vst [vmem:[#allocation18_spill] sm:$0xff] %v3742_v2 }
 0x274   :  { %v775_v32 = vpop.f32.mrf.mxu0 }
 0x275   :  { %v776_v23 = vadd.f32 %v3524_v55, %v775_v32  ;;  %v3744_v32 = vpop.f32.mrf.mxu3 }
 0x277   :  { %v1037_v22 = vmax.f32 %v776_v23, 0.0 }
 0x279   :  { %1632 = vmatmul.f32.gmra.mxu1 %v1037_v22  ;;  %1862 = vmatmul.f32.gmra.mxu3 %v1069_v1  ;;  %v3746_v23 = vpop.f32.mrf.mxu2  ;;  %v2514_v1 = vld [vmem:[%s4174_s3 + $0x3e8] sm:$0xff]  ;;  %v3754_v2 = vpop.f32.mrf.mxu1 }
 0x27a   :  { %2039 = vmatpush.msrb.mxu2 %v2514_v1  ;;  %4189 = vst [vmem:[#allocation19_spill] sm:$0xff] %v3754_v2 }
 0x27c   :  { %v778_v3 = vpop.f32.mrf.mxu0 }
 0x27d   :  { %v779_v38 = vadd.f32 %v3524_v55, %v778_v3 }
 0x27f   :  { %v1038_v0 = vmax.f32 %v779_v38, 0.0  ;;  %v3756_v38 = vpop.f32.mrf.mxu3 }
 0x280   :  { %4190 = vst [vmem:[#allocation20_spill] sm:$0xff] %v3756_v38 }
 0x281   :  { %1635 = vmatmul.f32.gmra.mxu1 %v1038_v0  ;;  %1865 = vmatmul.f32.gmra.mxu3 %v1070_v14  ;;  %v2513_v14 = vld [vmem:[%s4174_s3 + $0x3e0] sm:$0xff]  ;;  %v3761_v0 = vpop.f32.mrf.mxu2  ;;  %v3771_v2 = vpop.f32.mrf.mxu1 }
 0x282   :  { %2040 = vmatpush.msrb.mxu2 %v2513_v14  ;;  %4191 = vst [vmem:[#allocation21_spill] sm:$0xff] %v3771_v2 }
 0x284   :  { %v781_v22 = vpop.f32.mrf.mxu0 }
 0x285   :  { %v782_v29 = vadd.f32 %v3524_v55, %v781_v22  ;;  %v1072_v22 = vmax.f32 %v881_v59, 0.0 }
 0x287   :  { %v1039_v3 = vmax.f32 %v782_v29, 0.0 }
 0x289   :  { %1638 = vmatmul.f32.gmra.mxu1 %v1039_v3  ;;  %1868 = vmatmul.f32.gmra.mxu3 %v1071_v37  ;;  %v2512_v37 = vld [vmem:[%s4174_s3 + $0x3d8] sm:$0xff]  ;;  %v884_v3 = vadd.f32 %v3524_v55, %v3051_v20  ;;  %v3773_v14 = vpop.f32.mrf.mxu2 }
 0x28a   :  { %2041 = vmatpush.msrb.mxu2 %v2512_v37 }
 0x28c   :  { %v784_v1 = vpop.f32.mrf.mxu0 }
 0x28d   :  { %v785_v47 = vadd.f32 %v3524_v55, %v784_v1  ;;  %v1073_v1 = vmax.f32 %v884_v3, 0.0 }
 0x28f   :  { %v1040_v29 = vmax.f32 %v785_v47, 0.0  ;;  %v2511_v47 = vld [vmem:[%s4174_s3 + $0x3d0] sm:$0xff] }
 0x290   :  { %2042 = vmatpush.msrb.mxu2 %v2511_v47 }
 0x291   :  { %1708 = vmatmul.f32.vlgmr.msra.gmra.mxu2 %v1040_v29  ;;  %1938 = vmatmul.f32.vlgmr.msrb.gmra.mxu1 %v1072_v22  ;;  %v887_v22 = vadd.f32 %v3524_v55, %v3062_v28  ;;  %v3781_v29 = vpop.f32.mrf.mxu1  ;;  %v3784_v2 = vpop.f32.mrf.mxu2 }
 0x292   :  { %4192 = vst [vmem:[#allocation22_spill] sm:$0xff] %v3781_v29 }
 0x294   :  { %v787_v8 = vpop.f32.mrf.mxu0 }
 0x295   :  { %v788_v63 = vadd.f32 %v3524_v55, %v787_v8  ;;  %v1074_v8 = vmax.f32 %v887_v22, 0.0  ;;  %v2509_v22 = vld [vmem:[%s4174_s3 + $0x3c0] sm:$0xff] }
 0x297   :  { %v1041_v59 = vmax.f32 %v788_v63, 0.0  ;;  %v2510_v63 = vld [vmem:[%s4174_s3 + $0x3c8] sm:$0xff] }
 0x298   :  { %2043 = vmatpush.msrb.mxu2 %v2510_v63 }
 0x299   :  { %1711 = vmatmul.f32.gmra.mxu2 %v1041_v59  ;;  %1941 = vmatmul.f32.gmra.mxu1 %v1073_v1  ;;  %v890_v1 = vadd.f32 %v3524_v55, %v3078_v36  ;;  %v3792_v29 = vpop.f32.mrf.mxu1  ;;  %v3794_v38 = vpop.f32.mrf.mxu2 }
 0x29a   :  { %2044 = vmatpush.msrb.mxu2 %v2509_v22 }
 0x29b   :  { %v1075_v47 = vmax.f32 %v890_v1, 0.0 }
 0x29c   :  { %v790_v20 = vpop.f32.mrf.mxu0 }
 0x29d   :  { %v791_v37 = vadd.f32 %v3524_v55, %v790_v20 }
 0x29f   :  { %v1042_v3 = vmax.f32 %v791_v37, 0.0  ;;  %v893_v37 = vadd.f32 %v3524_v55, %v3093_v48 }
 0x2a1   :  { %1714 = vmatmul.f32.gmra.mxu2 %v1042_v3  ;;  %1944 = vmatmul.f32.gmra.mxu1 %v1074_v8  ;;  %v1076_v3 = vmax.f32 %v893_v37, 0.0  ;;  %v3802_v1 = vpop.f32.mrf.mxu1 }
 0x2a4   :  { %v793_v28 = vpop.f32.mrf.mxu0 }
 0x2a5   :  { %v794_v59 = vadd.f32 %v3524_v55, %v793_v28  ;;  %v2508_v28 = vld [vmem:[%s4174_s3 + $0x3b8] sm:$0xff] }
 0x2a6   :  { %2045 = vmatpush.msrb.mxu2 %v2508_v28 }
 0x2a7   :  { %v1043_v20 = vmax.f32 %v794_v59, 0.0  ;;  %v3807_v59 = vpop.f32.mrf.mxu2 }
 0x2a9   :  { %1717 = vmatmul.f32.gmra.mxu2 %v1043_v20  ;;  %1947 = vmatmul.f32.gmra.mxu1 %v1075_v47  ;;  %v896_v47 = vadd.f32 %v3524_v55, %v3110_v60 }
 0x2ab   :  { %v1077_v22 = vmax.f32 %v896_v47, 0.0 }
 0x2ac   :  { %v796_v36 = vpop.f32.mrf.mxu0 }
 0x2ad   :  { %v797_v8 = vadd.f32 %v3524_v55, %v796_v36  ;;  %v2507_v36 = vld [vmem:[%s4174_s3 + $0x3b0] sm:$0xff] }
 0x2ae   :  { %2046 = vmatpush.msrb.mxu2 %v2507_v36 }
 0x2af   :  { %v1044_v63 = vmax.f32 %v797_v8, 0.0  ;;  %v803_v8 = vadd.f32 %v3524_v55, %v3090_v45  ;;  %v3821_v60 = vpop.f32.mrf.mxu2  ;;  %v902_v45 = vadd.f32 %v3524_v55, %v3569_v16 }
 0x2b1   :  { %1720 = vmatmul.f32.gmra.mxu2 %v1044_v63  ;;  %1950 = vmatmul.f32.gmra.mxu1 %v1076_v3  ;;  %v899_v3 = vadd.f32 %v3524_v55, %v3125_v7  ;;  %v3819_v63 = vpop.f32.mrf.mxu1  ;;  %v1046_v28 = vmax.f32 %v803_v8, 0.0  ;;  %v1079_v36 = vmax.f32 %v902_v45, 0.0  ;;  %v2505_v8 = vld [vmem:[%s4174_s3 + $0x3a0] sm:$0xff]  ;;  %v812_v45 = vadd.f32 %v3524_v55, %v3136_v15 }
 0x2b2   :  { %v911_v15 = vadd.f32 %v3524_v55, %v3619_v54 }
 0x2b3   :  { %v1078_v47 = vmax.f32 %v899_v3, 0.0  ;;  %v809_v3 = vadd.f32 %v3524_v55, %v3122_v4  ;;  %v908_v4 = vadd.f32 %v3524_v55, %v3607_v52 }
 0x2b4   :  { %v799_v48 = vpop.f32.mrf.mxu0 }
 0x2b5   :  { %v800_v20 = vadd.f32 %v3524_v55, %v799_v48  ;;  %v2506_v48 = vld [vmem:[%s4174_s3 + $0x3a8] sm:$0xff] }
 0x2b6   :  { %2047 = vmatpush.msrb.mxu2 %v2506_v48 }
 0x2b7   :  { %v1045_v37 = vmax.f32 %v800_v20, 0.0  ;;  %v806_v20 = vadd.f32 %v3524_v55, %v3105_v56  ;;  %v905_v56 = vadd.f32 %v3524_v55, %v3586_v44  ;;  %v1049_v44 = vmax.f32 %v812_v45, 0.0 }
 0x2b8   :  { %2048 = vmatpush.msrb.mxu2 %v2505_v8  ;;  %v2503_v8 = vld [vmem:[%s4174_s3 + $0x390] sm:$0xff]  ;;  %v818_v45 = vadd.f32 %v3524_v55, %v3163_v33  ;;  %v917_v33 = vadd.f32 %v3524_v55, %v3656_v5  ;;  %v2169_v5 = vld [vmem:[%s4176_s5 + $0x78] sm:$0xff] }
 0x2b9   :  { %1723 = vmatmul.f32.gmra.mxu2 %v1045_v37  ;;  %1953 = vmatmul.f32.gmra.mxu1 %v1077_v22  ;;  %v3830_v7 = vpop.f32.mrf.mxu1  ;;  %v3832_v22 = vpop.f32.mrf.mxu2  ;;  %v1047_v37 = vmax.f32 %v806_v20, 0.0  ;;  %v2504_v20 = vld [vmem:[%s4174_s3 + $0x398] sm:$0xff] }
 0x2ba   :  { %2049 = vmatpush.msrb.mxu2 %v2504_v20  ;;  %v2502_v20 = vld [vmem:[%s4174_s3 + $0x388] sm:$0xff]  ;;  %v1051_v54 = vmax.f32 %v818_v45, 0.0  ;;  %2174 = vmatpush.msrb.mxu3 %v2169_v5 }
 0x2bc   :  { %2050 = vmatpush.msrb.mxu2 %v2503_v8  ;;  %v821_v8 = vadd.f32 %v3524_v55, %v3177_v43 }
 0x2be   :  { %2051 = vmatpush.msrb.mxu2 %v2502_v20  ;;  %v920_v20 = vadd.f32 %v3524_v55, %v3686_v21 }
 0x2c1   :  { %1726 = vmatmul.f32.gmra.mxu2 %v1046_v28  ;;  %1956 = vmatmul.f32.gmra.mxu1 %v1078_v47  ;;  %v3841_v16 = vpop.f32.mrf.mxu1  ;;  %v1048_v28 = vmax.f32 %v809_v3, 0.0  ;;  %v1080_v47 = vmax.f32 %v905_v56, 0.0  ;;  %v3843_v48 = vpop.f32.mrf.mxu2  ;;  %v815_v56 = vadd.f32 %v3524_v55, %v3152_v25  ;;  %v914_v25 = vadd.f32 %v3524_v55, %v3632_v62 }
 0x2c3   :  { %v1050_v52 = vmax.f32 %v815_v56, 0.0 }
 0x2c9   :  { %1729 = vmatmul.f32.gmra.mxu2 %v1047_v37  ;;  %1959 = vmatmul.f32.gmra.mxu1 %v1079_v36  ;;  %v1081_v37 = vmax.f32 %v908_v4, 0.0  ;;  %v3852_v36 = vpop.f32.mrf.mxu1  ;;  %v3857_v3 = vpop.f32.mrf.mxu2 }
 0x2d1   :  { %1732 = vmatmul.f32.gmra.mxu2 %v1048_v28  ;;  %1962 = vmatmul.f32.gmra.mxu1 %v1080_v47  ;;  %v1082_v28 = vmax.f32 %v911_v15, 0.0  ;;  %v3863_v47 = vpop.f32.mrf.mxu1  ;;  %v3872_v4 = vpop.f32.mrf.mxu2  ;;  %v1052_v15 = vmax.f32 %v821_v8, 0.0 }
 0x2d9   :  { %1735 = vmatmul.f32.gmra.mxu2 %v1049_v44  ;;  %1965 = vmatmul.f32.gmra.mxu1 %v1081_v37  ;;  %v1083_v44 = vmax.f32 %v914_v25, 0.0  ;;  %v2501_v37 = vld [vmem:[%s4174_s3 + $0x380] sm:$0xff]  ;;  %v3881_v56 = vpop.f32.mrf.mxu1  ;;  %v3883_v62 = vpop.f32.mrf.mxu2  ;;  %v1085_v25 = vmax.f32 %v920_v20, 0.0 }
 0x2da   :  { %2052 = vmatpush.msrb.mxu2 %v2501_v37 }
 0x2e1   :  { %1738 = vmatmul.f32.gmra.mxu2 %v1050_v52  ;;  %1968 = vmatmul.f32.gmra.mxu1 %v1082_v28  ;;  %v1084_v52 = vmax.f32 %v917_v33, 0.0  ;;  %v824_v28 = vadd.f32 %v3524_v55, %v3198_v57  ;;  %v3889_v45 = vpop.f32.mrf.mxu1  ;;  %v923_v57 = vadd.f32 %v3524_v55, %v3715_v41  ;;  %v2168_v33 = vld [vmem:[%s4176_s5 + $0x70] sm:$0xff] }
 0x2e2   :  { %2175 = vmatpush.msrb.mxu3 %v2168_v33 }
 0x2e3   :  { %v1053_v43 = vmax.f32 %v824_v28, 0.0  ;;  %v1086_v37 = vmax.f32 %v923_v57, 0.0  ;;  %v2166_v57 = vld [vmem:[%s4176_s5 + $0x60] sm:$0xff] }
 0x2e9   :  { %1741 = vmatmul.f32.gmra.mxu2 %v1051_v54  ;;  %1971 = vmatmul.f32.gmra.mxu1 %v1083_v44  ;;  %v3891_v54 = vpop.f32.mrf.mxu2  ;;  %v827_v44 = vadd.f32 %v3524_v55, %v3228_v12  ;;  %v3900_v8 = vpop.f32.mrf.mxu1  ;;  %v926_v12 = vadd.f32 %v3524_v55, %v3302_v11 }
 0x2eb   :  { %v1054_v21 = vmax.f32 %v827_v44, 0.0  ;;  %v1087_v28 = vmax.f32 %v926_v12, 0.0 }
 0x2f1   :  { %1744 = vmatmul.f32.gmra.mxu2 %v1052_v15  ;;  %1974 = vmatmul.f32.gmra.mxu1 %v1084_v52  ;;  %v3905_v15 = vpop.f32.mrf.mxu2  ;;  %v830_v52 = vadd.f32 %v3524_v55, %v3255_v27  ;;  %v3911_v20 = vpop.f32.mrf.mxu1  ;;  %v1381_v27 = vadd.f32 %v3734_v35, %v3564_v42  ;;  %v1384_v42 = vadd.f32 %v3746_v23, %v3581_v39 }
 0x2f2   :  { %v1387_v39 = vadd.f32 %v3761_v0, %v3600_v6  ;;  %v1390_v0 = vadd.f32 %v3773_v14, %v3615_v46 }
 0x2f3   :  { %v1055_v41 = vmax.f32 %v830_v52, 0.0  ;;  %v1527_v44 = vadd.f32 %v3617_v49, %v1381_v27  ;;  %v1528_v49 = vadd.f32 %v3629_v50, %v1384_v42  ;;  %v2165_v52 = vld [vmem:[%s4176_s5 + $0x58] sm:$0xff]  ;;  %v2162_v42 = vld [vmem:[%s4176_s5 + $0x40] sm:$0xff] }
 0x2f4   :  { %v1529_v50 = vadd.f32 %v3651_v58, %v1387_v39 }
 0x2f9   :  { %1747 = vmatmul.f32.gmra.mxu2 %v1053_v43  ;;  %1977 = vmatmul.f32.gmra.mxu1 %v1085_v25  ;;  %v2167_v43 = vld [vmem:[%s4176_s5 + $0x68] sm:$0xff]  ;;  %v929_v25 = vadd.f32 %v3524_v55, %v3309_v18  ;;  %v3918_v5 = vpop.f32.mrf.mxu2 }
 0x2fa   :  { %2176 = vmatpush.msrb.mxu3 %v2167_v43  ;;  %v2164_v43 = vld [vmem:[%s4176_s5 + $0x50] sm:$0xff] }
 0x2fb   :  { %v1088_v11 = vmax.f32 %v929_v25, 0.0  ;;  %v3953_v25 = vpop.f32.mrf.mxu1 }
 0x2fc   :  { %2177 = vmatpush.msrb.mxu3 %v2166_v57 }
 0x2fe   :  { %2178 = vmatpush.msrb.mxu3 %v2165_v52 }
 0x300   :  { %2179 = vmatpush.msrb.mxu3 %v2164_v43 }
 0x301   :  { %1750 = vmatmul.f32.gmra.mxu2 %v1054_v21  ;;  %1980 = vmatmul.f32.gmra.mxu1 %v1086_v37  ;;  %v932_v21 = vadd.f32 %v3524_v55, %v3319_v31  ;;  %v1642_v37 = vadd.f32 %v3830_v7, %v1527_v44  ;;  %v935_v31 = vadd.f32 %v3524_v55, %v3327_v40  ;;  %v2163_v44 = vld [vmem:[%s4176_s5 + $0x48] sm:$0xff] }
 0x302   :  { %v1643_v7 = vadd.f32 %v3841_v16, %v1528_v49  ;;  %v938_v40 = vadd.f32 %v3524_v55, %v3335_v51  ;;  %v1644_v16 = vadd.f32 %v3852_v36, %v1529_v50  ;;  %2180 = vmatpush.msrb.mxu3 %v2163_v44  ;;  %v941_v51 = vadd.f32 %v3524_v55, %v3342_v61  ;;  %v2160_v50 = vld [vmem:[%s4176_s5 + $0x30] sm:$0xff] }
 0x303   :  { %v1089_v35 = vmax.f32 %v932_v21, 0.0  ;;  %v1090_v23 = vmax.f32 %v935_v31, 0.0  ;;  %v3970_v46 = vpop.f32.mrf.mxu1  ;;  %v944_v61 = vadd.f32 %v3524_v55, %v3366_v17  ;;  %v2161_v17 = vld [vmem:[%s4176_s5 + $0x38] sm:$0xff] }
 0x304   :  { %v1091_v58 = vmax.f32 %v938_v40, 0.0  ;;  %v1092_v14 = vmax.f32 %v941_v51, 0.0  ;;  %2181 = vmatpush.msrb.mxu3 %v2162_v42  ;;  %v4196_v42 = vld [vmem:[#allocation10_spill] sm:$0xff] }
 0x306   :  { %2182 = vmatpush.msrb.mxu3 %v2161_v17  ;;  %v2157_v17 = vld [vmem:[%s4176_s5 + $0x18] sm:$0xff] }
 0x308   :  { %2183 = vmatpush.msrb.mxu3 %v2160_v50 }
 0x309   :  { %1753 = vmatmul.f32.gmra.mxu2 %v1055_v41  ;;  %1983 = vmatmul.f32.gmra.mxu1 %v1087_v28  ;;  %v3944_v28 = vpop.f32.mrf.mxu3 }
 0x311   :  { %2053 = vmatmul.f32.vlgmr.msrb.gmra.mxu2 %v1088_v11  ;;  %v1530_v11 = vadd.f32 %v3678_v9, %v1390_v0  ;;  %v3963_v57 = vpop.f32.mrf.mxu3  ;;  %v1393_v9 = vadd.f32 %v3784_v2, %v3627_v34  ;;  %v1396_v2 = vadd.f32 %v3794_v38, %v3649_v26  ;;  %v1093_v34 = vmax.f32 %v944_v61, 0.0 }
 0x312   :  { %v1399_v38 = vadd.f32 %v3807_v59, %v3676_v13  ;;  %v1402_v13 = vadd.f32 %v3821_v60, %v3708_v19  ;;  %v4195_v19 = vld [vmem:[#allocation17_spill] sm:$0xff] }
 0x313   :  { %v1645_v36 = vadd.f32 %v3863_v47, %v1530_v11  ;;  %v1532_v31 = vadd.f32 %v3731_v30, %v1396_v2  ;;  %v4194_v11 = vld [vmem:[#allocation9_spill] sm:$0xff]  ;;  %v1405_v60 = vadd.f32 %v3832_v22, %v4195_v19  ;;  %v4197_v22 = vld [vmem:[#allocation18_spill] sm:$0xff] }
 0x314   :  { %v1709_v18 = vpop.f32.mrf.mxu2  ;;  %v1533_v30 = vadd.f32 %v3744_v32, %v1399_v38 }
 0x315   :  { %v3929_v33 = vadd.f32 %v1709_v18, %v1642_v37  ;;  %v1531_v18 = vadd.f32 %v3710_v10, %v1393_v9  ;;  %v3987_v10 = vpop.f32.mrf.mxu1  ;;  %v1535_v9 = vadd.f32 %v3944_v28, %v1405_v60 }
 0x317   :  { %v1646_v47 = vadd.f32 %v3881_v56, %v1531_v18  ;;  %v947_v56 = vadd.f32 %v3524_v55, %v3406_v53  ;;  %v950_v53 = vadd.f32 %v3524_v55, %v3446_v24  ;;  %v953_v24 = vadd.f32 %v3524_v55, %v4194_v11 }
 0x318   :  { %v1650_v61 = vadd.f32 %v3953_v25, %v1535_v9 }
 0x319   :  { %2056 = vmatmul.f32.gmra.mxu2 %v1089_v35  ;;  %v3981_v35 = vpop.f32.mrf.mxu3  ;;  %v1095_v59 = vmax.f32 %v950_v53, 0.0 }
 0x31c   :  { %v1712_v12 = vpop.f32.mrf.mxu2 }
 0x31d   :  { %v3940_v41 = vadd.f32 %v1712_v12, %v1643_v7  ;;  %v1647_v7 = vadd.f32 %v3889_v45, %v1532_v31  ;;  %v1627_v43 = vpop.f32.mrf.mxu1  ;;  %v1648_v45 = vadd.f32 %v3900_v8, %v1533_v30  ;;  %v4199_v30 = vld [vmem:[#allocation19_spill] sm:$0xff] }
 0x321   :  { %2059 = vmatmul.f32.gmra.mxu2 %v1090_v23  ;;  %v1512_v26 = vpop.f32.mrf.mxu3  ;;  %v1094_v23 = vmax.f32 %v947_v56, 0.0  ;;  %v4198_v56 = vld [vmem:[#allocation11_spill] sm:$0xff] }
 0x324   :  { %v1715_v27 = vpop.f32.mrf.mxu2 }
 0x325   :  { %v3955_v6 = vadd.f32 %v1715_v27, %v1644_v16  ;;  %v4193_v27 = vld [vmem:[#allocation20_spill] sm:$0xff]  ;;  %v1630_v44 = vpop.f32.mrf.mxu1 }
 0x326   :  { %v1534_v0 = vadd.f32 %v4193_v27, %v1402_v13 }
 0x328   :  { %v1649_v8 = vadd.f32 %v3911_v20, %v1534_v0  ;;  %v956_v20 = vadd.f32 %v3524_v55, %v4196_v42 }
 0x329   :  { %2062 = vmatmul.f32.gmra.mxu2 %v1091_v58  ;;  %v1515_v32 = vpop.f32.mrf.mxu3  ;;  %v2159_v58 = vld [vmem:[%s4176_s5 + $0x28] sm:$0xff] }
 0x32a   :  { %2184 = vmatpush.msrb.mxu3 %v2159_v58  ;;  %v1097_v28 = vmax.f32 %v956_v20, 0.0 }
 0x32c   :  { %v1718_v21 = vpop.f32.mrf.mxu2 }
 0x32d   :  { %v3968_v37 = vadd.f32 %v1718_v21, %v1645_v36  ;;  %v1096_v21 = vmax.f32 %v953_v24, 0.0  ;;  %v1633_v2 = vpop.f32.mrf.mxu1  ;;  %v2155_v24 = vld [vmem:[%s4176_s5 + $0x8] sm:$0xff] }
 0x331   :  { %2065 = vmatmul.f32.gmra.mxu2 %v1092_v14  ;;  %v2158_v14 = vld [vmem:[%s4176_s5 + $0x20] sm:$0xff]  ;;  %v1518_v18 = vpop.f32.mrf.mxu3 }
 0x332   :  { %2185 = vmatpush.msrb.mxu3 %v2158_v14  ;;  %v2154_v14 = vld [vmem:[%s4176_s5] sm:$0xff] }
 0x334   :  { %v1721_v49 = vpop.f32.mrf.mxu2  ;;  %2186 = vmatpush.msrb.mxu3 %v2157_v17 }
 0x335   :  { %v3983_v52 = vadd.f32 %v1721_v49, %v1646_v47 }
 0x339   :  { %2068 = vmatmul.f32.gmra.mxu2 %v1093_v34  ;;  %v1408_v34 = vadd.f32 %v3843_v48, %v4197_v22  ;;  %v1411_v48 = vadd.f32 %v3857_v3, %v4199_v30  ;;  %v4201_v3 = vld [vmem:[#allocation21_spill] sm:$0xff] }
 0x33a   :  { %v1414_v58 = vadd.f32 %v3872_v4, %v4201_v3  ;;  %v4203_v4 = vld [vmem:[#allocation22_spill] sm:$0xff] }
 0x33b   :  { %v1536_v31 = vadd.f32 %v3963_v57, %v1408_v34  ;;  %v1636_v57 = vpop.f32.mrf.mxu1  ;;  %v1537_v53 = vadd.f32 %v3981_v35, %v1411_v48 }
 0x33c   :  { %v1724_v12 = vpop.f32.mrf.mxu2  ;;  %v1538_v35 = vadd.f32 %v1512_v26, %v1414_v58  ;;  %v1417_v26 = vadd.f32 %v3883_v62, %v4203_v4 }
 0x33d   :  { %v3996_v39 = vadd.f32 %v1724_v12, %v1647_v7  ;;  %v959_v7 = vadd.f32 %v3524_v55, %v4198_v56  ;;  %v1651_v25 = vadd.f32 %v3970_v46, %v1536_v31  ;;  %v1521_v12 = vpop.f32.mrf.mxu3  ;;  %v1652_v13 = vadd.f32 %v3987_v10, %v1537_v53  ;;  %v4202_v10 = vld [vmem:[#allocation13_spill] sm:$0xff] }
 0x33e   :  { %v1653_v19 = vadd.f32 %v1627_v43, %v1538_v35  ;;  %v1539_v20 = vadd.f32 %v1515_v32, %v1417_v26  ;;  %v1420_v31 = vadd.f32 %v3891_v54, %v3792_v29 }
 0x33f   :  { %v1098_v50 = vmax.f32 %v959_v7, 0.0  ;;  %v4205_v7 = vld [vmem:[#allocation15_spill] sm:$0xff] }
 0x340   :  { %v1654_v22 = vadd.f32 %v1630_v44, %v1539_v20  ;;  %v1540_v17 = vadd.f32 %v1518_v18, %v1420_v31  ;;  %v1423_v44 = vadd.f32 %v3905_v15, %v3802_v1 }
 0x341   :  { %2071 = vmatmul.f32.gmra.mxu2 %v1094_v23 }
 0x342   :  { %v1541_v53 = vadd.f32 %v1521_v12, %v1423_v44 }
 0x344   :  { %v1727_v40 = vpop.f32.mrf.mxu2  ;;  %v1656_v29 = vadd.f32 %v1636_v57, %v1541_v53 }
 0x345   :  { %v4007_v16 = vadd.f32 %v1727_v40, %v1648_v45  ;;  %v2156_v45 = vld [vmem:[%s4176_s5 + $0x10] sm:$0xff]  ;;  %v1524_v0 = vpop.f32.mrf.mxu3 }
 0x346   :  { %2187 = vmatpush.msrb.mxu3 %v2156_v45  ;;  %v4200_v40 = vld [vmem:[#allocation12_spill] sm:$0xff] }
 0x347   :  { %v962_v46 = vadd.f32 %v3524_v55, %v4200_v40  ;;  %v2531_v55 = vld [vmem:[%s4173_s2] ss:$0 sm:$0xff]  ;;  %v4206_v45 = vld [vmem:[#allocation16_spill] sm:$0xff] }
 0x348   :  { %2188 = vmatpush.msrb.mxu3 %v2155_v24  ;;  %v974_v40 = vadd.f32 %v2531_v55, %v4206_v45  ;;  %v4090_v24 = vld [vmem:[%s4175_s4] ss:$0 sm:$0xff] }
 0x349   :  { %2074 = vmatmul.f32.gmra.mxu2 %v1095_v59  ;;  %v1099_v11 = vmax.f32 %v962_v46, 0.0 }
 0x34a   :  { %2189 = vmatpush.msrb.mxu3 %v2154_v14 }
 0x34c   :  { %v1730_v51 = vpop.f32.mrf.mxu2 }
 0x34d   :  { %v4018_v36 = vadd.f32 %v1730_v51, %v1649_v8  ;;  %v1639_v8 = vpop.f32.mrf.mxu1  ;;  %v965_v51 = vadd.f32 %v2531_v55, %v4202_v10  ;;  %v1824_v42 = vpop.f32.mrf.mxu3 }
 0x34e   :  { %v1872_v12 = vadd.f32 %v1824_v42, %v3929_v33 }
 0x34f   :  { %v1100_v9 = vmax.f32 %v965_v51, 0.0 }
 0x351   :  { %2077 = vmatmul.f32.gmra.mxu2 %v1096_v21 }
 0x354   :  { %v1733_v47 = vpop.f32.mrf.mxu2 }
 0x355   :  { %v4029_v49 = vadd.f32 %v1733_v47, %v1650_v61  ;;  %v4204_v61 = vld [vmem:[#allocation14_spill] sm:$0xff]  ;;  %v1939_v34 = vpop.f32.mrf.mxu1  ;;  %v1827_v56 = vpop.f32.mrf.mxu3 }
 0x356   :  { %v968_v47 = vadd.f32 %v2531_v55, %v4204_v61  ;;  %v1987_v57 = vadd.f32 %v1939_v34, %v1872_v12 }
 0x358   :  { %v1101_v62 = vmax.f32 %v968_v47, 0.0 }
 0x359   :  { %2080 = vmatmul.f32.gmra.mxu2 %v1097_v28 }
 0x35c   :  { %v1736_v38 = vpop.f32.mrf.mxu2 }
 0x35d   :  { %v4040_v23 = vadd.f32 %v1736_v38, %v1651_v25  ;;  %v971_v25 = vadd.f32 %v2531_v55, %v4205_v7  ;;  %v1655_v38 = vadd.f32 %v1633_v2, %v1540_v17  ;;  %v1942_v48 = vpop.f32.mrf.mxu1  ;;  %v1830_v54 = vpop.f32.mrf.mxu3  ;;  %v1426_v2 = vadd.f32 %v3918_v5, %v3819_v63 }
 0x35e   :  { %v1873_v5 = vadd.f32 %v1827_v56, %v3940_v41  ;;  %v1874_v4 = vadd.f32 %v1830_v54, %v3955_v6 }
 0x35f   :  { %v1542_v3 = vadd.f32 %v1524_v0, %v1426_v2 }
 0x360   :  { %v1988_v51 = vadd.f32 %v1942_v48, %v1873_v5 }
 0x361   :  { %2083 = vmatmul.f32.gmra.mxu2 %v1098_v50  ;;  %v1102_v50 = vmax.f32 %v971_v25, 0.0  ;;  %v1657_v58 = vadd.f32 %v1639_v8, %v1542_v3 }
 0x364   :  { %v1739_v59 = vpop.f32.mrf.mxu2 }
 0x365   :  { %v4051_v27 = vadd.f32 %v1739_v59, %v1652_v13  ;;  %v1103_v13 = vmax.f32 %v974_v40, 0.0  ;;  %v1945_v59 = vpop.f32.mrf.mxu1  ;;  %v1833_v15 = vpop.f32.mrf.mxu3 }
 0x366   :  { %v1989_v42 = vadd.f32 %v1945_v59, %v1874_v4  ;;  %v1875_v47 = vadd.f32 %v1833_v15, %v3968_v37 }
 0x369   :  { %2086 = vmatmul.f32.gmra.mxu2 %v1099_v11 }
 0x36c   :  { %v1742_v60 = vpop.f32.mrf.mxu2 }
 0x36d   :  { %v4062_v21 = vadd.f32 %v1742_v60, %v1653_v19  ;;  %v1948_v35 = vpop.f32.mrf.mxu1  ;;  %v1836_v8 = vpop.f32.mrf.mxu3 }
 0x36e   :  { %v1876_v6 = vadd.f32 %v1836_v8, %v3983_v52 }
 0x371   :  { %2089 = vmatmul.f32.gmra.mxu2 %v1100_v9 }
 0x374   :  { %v1745_v43 = vpop.f32.mrf.mxu2 }
 0x375   :  { %v4070_v28 = vadd.f32 %v1745_v43, %v1654_v22  ;;  %v1951_v19 = vpop.f32.mrf.mxu1  ;;  %v1839_v14 = vpop.f32.mrf.mxu3  ;;  %v1990_v43 = vadd.f32 %v1948_v35, %v1875_v47 }
 0x376   :  { %v1877_v37 = vadd.f32 %v1839_v14, %v3996_v39 }
 0x379   :  { %2092 = vmatmul.f32.gmra.mxu2 %v1101_v62 }
 0x37c   :  { %v1748_v30 = vpop.f32.mrf.mxu2 }
 0x37d   :  { %v4075_v32 = vadd.f32 %v1748_v30, %v1655_v38  ;;  %v1954_v41 = vpop.f32.mrf.mxu1  ;;  %v1842_v31 = vpop.f32.mrf.mxu3  ;;  %v1991_v38 = vadd.f32 %v1951_v19, %v1876_v6 }
 0x37e   :  { %v1992_v40 = vadd.f32 %v1954_v41, %v1877_v37  ;;  %v1878_v52 = vadd.f32 %v1842_v31, %v4007_v16 }
 0x381   :  { %2095 = vmatmul.f32.gmra.mxu2 %v1102_v50 }
 0x384   :  { %v1751_v18 = vpop.f32.mrf.mxu2 }
 0x385   :  { %v4080_v46 = vadd.f32 %v1751_v18, %v1656_v29  ;;  %v1957_v7 = vpop.f32.mrf.mxu1  ;;  %v1845_v44 = vpop.f32.mrf.mxu3 }
 0x386   :  { %v1993_v59 = vadd.f32 %v1957_v7, %v1878_v52  ;;  %v1879_v39 = vadd.f32 %v1845_v44, %v4018_v36 }
 0x389   :  { %2098 = vmatmul.f32.gmra.mxu2 %v1103_v13 }
 0x38c   :  { %v1754_v11 = vpop.f32.mrf.mxu2 }
 0x38d   :  { %v4084_v1 = vadd.f32 %v1754_v11, %v1657_v58  ;;  %v1960_v45 = vpop.f32.mrf.mxu1  ;;  %v1848_v2 = vpop.f32.mrf.mxu3 }
 0x38e   :  { %v1880_v5 = vadd.f32 %v1848_v2, %v4029_v49 }
 0x394   :  { %v2054_v55 = vpop.f32.mrf.mxu2 }
 0x395   :  { %v2102_v63 = vadd.f32 %v2054_v55, %v1987_v57  ;;  %v1963_v3 = vpop.f32.mrf.mxu1  ;;  %v1851_v35 = vpop.f32.mrf.mxu3  ;;  %v1994_v57 = vadd.f32 %v1960_v45, %v1879_v39 }
 0x396   :  { %v1881_v36 = vadd.f32 %v1851_v35, %v4040_v23 }
 0x397   :  { %v2122_v0 = vadd.f32 %v4090_v24, %v2102_v63 }
 0x399   :  { %v2138_v10 = vmax.f32 %v2122_v0, 0.0 }
 0x39b   :  { %2190 = vmatmul.f32.vlgmr.msrb.gmra.mxu3 %v2138_v10  ;;  %v1995_v10 = vadd.f32 %v1963_v3, %v1880_v5  ;;  %v2529_v5 = vld [vmem:[#allocation5] ss:$0 sm:$0xff] }
 0x39c   :  { %v2057_v60 = vpop.f32.mrf.mxu2 }
 0x39d   :  { %v2103_v33 = vadd.f32 %v2057_v60, %v1988_v51  ;;  %v1966_v16 = vpop.f32.mrf.mxu1  ;;  %v1854_v51 = vpop.f32.mrf.mxu3 }
 0x39e   :  { %v1882_v49 = vadd.f32 %v1854_v51, %v4051_v27 }
 0x39f   :  { %v2123_v26 = vadd.f32 %v4090_v24, %v2103_v33 }
 0x3a1   :  { %v2139_v9 = vmax.f32 %v2123_v26, 0.0 }
 0x3a3   :  { %2193 = vmatmul.f32.gmra.mxu3 %v2139_v9  ;;  %v1996_v9 = vadd.f32 %v1966_v16, %v1881_v36 }
 0x3a4   :  { %v2060_v20 = vpop.f32.mrf.mxu2 }
 0x3a5   :  { %v2104_v61 = vadd.f32 %v2060_v20, %v1989_v42  ;;  %v1969_v4 = vpop.f32.mrf.mxu1  ;;  %v1857_v20 = vpop.f32.mrf.mxu3 }
 0x3a6   :  { %v1883_v23 = vadd.f32 %v1857_v20, %v4062_v21 }
 0x3a7   :  { %v2124_v22 = vadd.f32 %v4090_v24, %v2104_v61 }
 0x3a9   :  { %v2140_v34 = vmax.f32 %v2124_v22, 0.0  ;;  %v1997_v22 = vadd.f32 %v1969_v4, %v1882_v49 }
 0x3ab   :  { %2196 = vmatmul.f32.gmra.mxu3 %v2140_v34 }
 0x3ac   :  { %v2063_v62 = vpop.f32.mrf.mxu2 }
 0x3ad   :  { %v2105_v17 = vadd.f32 %v2063_v62, %v1990_v43  ;;  %v1972_v47 = vpop.f32.mrf.mxu1  ;;  %v1860_v62 = vpop.f32.mrf.mxu3 }
 0x3ae   :  { %v1998_v6 = vadd.f32 %v1972_v47, %v1883_v23  ;;  %v1884_v27 = vadd.f32 %v1860_v62, %v4070_v28 }
 0x3af   :  { %v2125_v56 = vadd.f32 %v4090_v24, %v2105_v17 }
 0x3b1   :  { %v2141_v25 = vmax.f32 %v2125_v56, 0.0 }
 0x3b3   :  { %2199 = vmatmul.f32.gmra.mxu3 %v2141_v25 }
 0x3b4   :  { %v2066_v30 = vpop.f32.mrf.mxu2 }
 0x3b5   :  { %v2106_v48 = vadd.f32 %v2066_v30, %v1991_v38  ;;  %v1975_v56 = vpop.f32.mrf.mxu1 }
 0x3b6   :  { %v1999_v44 = vadd.f32 %v1975_v56, %v1884_v27 }
 0x3b7   :  { %v2126_v50 = vadd.f32 %v4090_v24, %v2106_v48  ;;  %v1863_v48 = vpop.f32.mrf.mxu3 }
 0x3b9   :  { %v2142_v53 = vmax.f32 %v2126_v50, 0.0 }
 0x3bb   :  { %2202 = vmatmul.f32.gmra.mxu3 %v2142_v53  ;;  %v1885_v53 = vadd.f32 %v1863_v48, %v4075_v32 }
 0x3bc   :  { %v2069_v29 = vpop.f32.mrf.mxu2 }
 0x3bd   :  { %v2107_v54 = vadd.f32 %v2069_v29, %v1992_v40  ;;  %v1978_v21 = vpop.f32.mrf.mxu1 }
 0x3be   :  { %v2000_v29 = vadd.f32 %v1978_v21, %v1885_v53 }
 0x3bf   :  { %v2127_v18 = vadd.f32 %v4090_v24, %v2107_v54  ;;  %v1866_v54 = vpop.f32.mrf.mxu3 }
 0x3c0   :  { %v1886_v28 = vadd.f32 %v1866_v54, %v4080_v46 }
 0x3c1   :  { %v2143_v13 = vmax.f32 %v2127_v18, 0.0 }
 0x3c3   :  { %2205 = vmatmul.f32.gmra.mxu3 %v2143_v13 }
 0x3c4   :  { %v2072_v58 = vpop.f32.mrf.mxu2 }
 0x3c5   :  { %v2108_v11 = vadd.f32 %v2072_v58, %v1993_v59  ;;  %v1981_v13 = vpop.f32.mrf.mxu1 }
 0x3c6   :  { %v2001_v3 = vadd.f32 %v1981_v13, %v1886_v28 }
 0x3c7   :  { %v2128_v15 = vadd.f32 %v4090_v24, %v2108_v11  ;;  %v1869_v39 = vpop.f32.mrf.mxu3 }
 0x3c8   :  { %v1887_v32 = vadd.f32 %v1869_v39, %v4084_v1 }
 0x3c9   :  { %v2144_v12 = vmax.f32 %v2128_v15, 0.0 }
 0x3cb   :  { %2208 = vmatmul.f32.gmra.mxu3 %v2144_v12 }
 0x3cc   :  { %v2075_v55 = vpop.f32.mrf.mxu2 }
 0x3cd   :  { %v2109_v63 = vadd.f32 %v2075_v55, %v1994_v57  ;;  %v1984_v35 = vpop.f32.mrf.mxu1 }
 0x3ce   :  { %v2002_v57 = vadd.f32 %v1984_v35, %v1887_v32 }
 0x3cf   :  { %v2129_v0 = vadd.f32 %v4090_v24, %v2109_v63 }
 0x3d1   :  { %v2145_v8 = vmax.f32 %v2129_v0, 0.0 }
 0x3d3   :  { %2211 = vmatmul.f32.gmra.mxu3 %v2145_v8 }
 0x3d4   :  { %v2078_v19 = vpop.f32.mrf.mxu2 }
 0x3d5   :  { %v2110_v60 = vadd.f32 %v2078_v19, %v1995_v10 }
 0x3d7   :  { %v2130_v33 = vadd.f32 %v4090_v24, %v2110_v60 }
 0x3d9   :  { %v2146_v26 = vmax.f32 %v2130_v33, 0.0 }
 0x3db   :  { %2214 = vmatmul.f32.gmra.mxu3 %v2146_v26 }
 0x3dc   :  { %v2081_v14 = vpop.f32.mrf.mxu2 }
 0x3dd   :  { %v2111_v42 = vadd.f32 %v2081_v14, %v1996_v9 }
 0x3df   :  { %v2131_v61 = vadd.f32 %v4090_v24, %v2111_v42 }
 0x3e1   :  { %v2147_v41 = vmax.f32 %v2131_v61, 0.0 }
 0x3e3   :  { %2217 = vmatmul.f32.gmra.mxu3 %v2147_v41 }
 0x3e4   :  { %v2084_v34 = vpop.f32.mrf.mxu2 }
 0x3e5   :  { %v2112_v43 = vadd.f32 %v2084_v34, %v1997_v22 }
 0x3e7   :  { %v2132_v31 = vadd.f32 %v4090_v24, %v2112_v43 }
 0x3e9   :  { %v2148_v17 = vmax.f32 %v2132_v31, 0.0 }
 0x3eb   :  { %2220 = vmatmul.f32.gmra.mxu3 %v2148_v17 }
 0x3ec   :  { %v2087_v7 = vpop.f32.mrf.mxu2 }
 0x3ed   :  { %v2113_v25 = vadd.f32 %v2087_v7, %v1998_v6 }
 0x3ef   :  { %v2133_v38 = vadd.f32 %v4090_v24, %v2113_v25 }
 0x3f1   :  { %v2149_v30 = vmax.f32 %v2133_v38, 0.0 }
 0x3f3   :  { %2223 = vmatmul.f32.gmra.mxu3 %v2149_v30 }
 0x3f4   :  { %v2090_v37 = vpop.f32.mrf.mxu2 }
 0x3f5   :  { %v2114_v50 = vadd.f32 %v2090_v37, %v1999_v44 }
 0x3f7   :  { %v2134_v45 = vadd.f32 %v4090_v24, %v2114_v50 }
 0x3f9   :  { %v2150_v40 = vmax.f32 %v2134_v45, 0.0 }
 0x3fb   :  { %2226 = vmatmul.f32.gmra.mxu3 %v2150_v40 }
 0x3fc   :  { %v2093_v52 = vpop.f32.mrf.mxu2 }
 0x3fd   :  { %v2115_v18 = vadd.f32 %v2093_v52, %v2000_v29 }
 0x3ff   :  { %v2135_v2 = vadd.f32 %v4090_v24, %v2115_v18 }
 0x401   :  { %v2151_v59 = vmax.f32 %v2135_v2, 0.0 }
 0x403   :  { %2229 = vmatmul.f32.gmra.mxu3 %v2151_v59 }
 0x404   :  { %v2096_v58 = vpop.f32.mrf.mxu2 }
 0x405   :  { %v2116_v11 = vadd.f32 %v2096_v58, %v2001_v3 }
 0x407   :  { %v2136_v15 = vadd.f32 %v4090_v24, %v2116_v11 }
 0x409   :  { %v2152_v12 = vmax.f32 %v2136_v15, 0.0 }
 0x40b   :  { %2232 = vmatmul.f32.gmra.mxu3 %v2152_v12 }
 0x40c   :  { %v2099_v55 = vpop.f32.mrf.mxu2 }
 0x40d   :  { %v2117_v63 = vadd.f32 %v2099_v55, %v2002_v57 }
 0x40f   :  { %v2137_v46 = vadd.f32 %v4090_v24, %v2117_v63 }
 0x411   :  { %v2153_v16 = vmax.f32 %v2137_v46, 0.0 }
 0x413   :  { %2235 = vmatmul.f32.gmra.mxu3 %v2153_v16 }
 0x41e   :  { %v2191_v0 = vpop.f32.mrf.mxu3 }
 0x41f   :  { %v2192_v8 = vadd.f32 %v2529_v5, %v2191_v0 }
 0x421   :  { %v2239_v10 = vmax.f32 %v2192_v8, 0.0 }
 0x423   :  { %2255 = vst [vmem:[%s4178_s7] sm:$0xff] %v2239_v10 }
 0x426   :  { %v2194_v1 = vpop.f32.mrf.mxu3 }
 0x427   :  { %v2195_v51 = vadd.f32 %v2529_v5, %v2194_v1 }
 0x429   :  { %v2240_v19 = vmax.f32 %v2195_v51, 0.0 }
 0x42b   :  { %2256 = vst [vmem:[%s4178_s7 + $0x8] sm:$0xff] %v2240_v19 }
 0x42e   :  { %v2197_v60 = vpop.f32.mrf.mxu3 }
 0x42f   :  { %v2198_v36 = vadd.f32 %v2529_v5, %v2197_v60 }
 0x431   :  { %v2241_v24 = vmax.f32 %v2198_v36, 0.0 }
 0x433   :  { %2257 = vst [vmem:[%s4178_s7 + $0x10] sm:$0xff] %v2241_v24 }
 0x436   :  { %v2200_v33 = vpop.f32.mrf.mxu3 }
 0x437   :  { %v2201_v4 = vadd.f32 %v2529_v5, %v2200_v33 }
 0x439   :  { %v2242_v26 = vmax.f32 %v2201_v4, 0.0 }
 0x43b   :  { %2258 = vst [vmem:[%s4178_s7 + $0x18] sm:$0xff] %v2242_v26 }
 0x43e   :  { %v2203_v9 = vpop.f32.mrf.mxu3 }
 0x43f   :  { %v2204_v14 = vadd.f32 %v2529_v5, %v2203_v9 }
 0x441   :  { %v2243_v42 = vmax.f32 %v2204_v14, 0.0 }
 0x443   :  { %2259 = vst [vmem:[%s4178_s7 + $0x20] sm:$0xff] %v2243_v42 }
 0x446   :  { %v2206_v20 = vpop.f32.mrf.mxu3 }
 0x447   :  { %v2207_v49 = vadd.f32 %v2529_v5, %v2206_v20 }
 0x449   :  { %v2244_v61 = vmax.f32 %v2207_v49, 0.0 }
 0x44b   :  { %2260 = vst [vmem:[%s4178_s7 + $0x28] sm:$0xff] %v2244_v61 }
 0x44e   :  { %v2209_v41 = vpop.f32.mrf.mxu3 }
 0x44f   :  { %v2210_v47 = vadd.f32 %v2529_v5, %v2209_v41 }
 0x451   :  { %v2245_v22 = vmax.f32 %v2210_v47, 0.0 }
 0x453   :  { %2261 = vst [vmem:[%s4178_s7 + $0x30] sm:$0xff] %v2245_v22 }
 0x456   :  { %v2212_v34 = vpop.f32.mrf.mxu3 }
 0x457   :  { %v2213_v43 = vadd.f32 %v2529_v5, %v2212_v34 }
 0x459   :  { %v2246_v23 = vmax.f32 %v2213_v43, 0.0 }
 0x45b   :  { %2262 = vst [vmem:[%s4178_s7 + $0x38] sm:$0xff] %v2246_v23 }
 0x45e   :  { %v2215_v31 = vpop.f32.mrf.mxu3 }
 0x45f   :  { %v2216_v62 = vadd.f32 %v2529_v5, %v2215_v31 }
 0x461   :  { %v2247_v17 = vmax.f32 %v2216_v62, 0.0 }
 0x463   :  { %2263 = vst [vmem:[%s4178_s7 + $0x40] sm:$0xff] %v2247_v17 }
 0x466   :  { %v2218_v6 = vpop.f32.mrf.mxu3 }
 0x467   :  { %v2219_v56 = vadd.f32 %v2529_v5, %v2218_v6 }
 0x469   :  { %v2248_v7 = vmax.f32 %v2219_v56, 0.0 }
 0x46b   :  { %2264 = vst [vmem:[%s4178_s7 + $0x48] sm:$0xff] %v2248_v7 }
 0x46e   :  { %v2221_v25 = vpop.f32.mrf.mxu3 }
 0x46f   :  { %v2222_v27 = vadd.f32 %v2529_v5, %v2221_v25 }
 0x471   :  { %v2249_v38 = vmax.f32 %v2222_v27, 0.0 }
 0x473   :  { %2265 = vst [vmem:[%s4178_s7 + $0x50] sm:$0xff] %v2249_v38 }
 0x476   :  { %v2224_v30 = vpop.f32.mrf.mxu3 }
 0x477   :  { %v2225_v48 = vadd.f32 %v2529_v5, %v2224_v30 }
 0x479   :  { %v2250_v44 = vmax.f32 %v2225_v48, 0.0 }
 0x47b   :  { %2266 = vst [vmem:[%s4178_s7 + $0x58] sm:$0xff] %v2250_v44 }
 0x47e   :  { %v2227_v37 = vpop.f32.mrf.mxu3 }
 0x47f   :  { %v2228_v50 = vadd.f32 %v2529_v5, %v2227_v37 }
 0x481   :  { %v2251_v21 = vmax.f32 %v2228_v50, 0.0 }
 0x483   :  { %2267 = vst [vmem:[%s4178_s7 + $0x60] sm:$0xff] %v2251_v21 }
 0x486   :  { %v2230_v53 = vpop.f32.mrf.mxu3 }
 0x487   :  { %v2231_v45 = vadd.f32 %v2529_v5, %v2230_v53 }
 0x489   :  { %v2252_v40 = vmax.f32 %v2231_v45, 0.0 }
 0x48b   :  { %2268 = vst [vmem:[%s4178_s7 + $0x68] sm:$0xff] %v2252_v40 }
 0x48e   :  { %v2233_v29 = vpop.f32.mrf.mxu3 }
 0x48f   :  { %v2234_v54 = vadd.f32 %v2529_v5, %v2233_v29 }
 0x491   :  { %v2253_v52 = vmax.f32 %v2234_v54, 0.0 }
 0x493   :  { %2269 = vst [vmem:[%s4178_s7 + $0x70] sm:$0xff] %v2253_v52 }
 0x496   :  { %v2236_v18 = vpop.f32.mrf.mxu3 }
 0x497   :  { %v2237_v28 = vadd.f32 %v2529_v5, %v2236_v18 }
 0x499   :  { %v2254_v2 = vmax.f32 %v2237_v28, 0.0 }
 0x49b   :  { %2270 = vst [vmem:[%s4178_s7 + $0x78] sm:$0xff] %v2254_v2 }
 0x49c   :  { %2275 = vsyncpa [#allocation4], 1 }
 0x49d   :  { %2276 = vsyncpa [#allocation6], 1 }

</bundles_post_ra>
